<compile_context>
chip_gen: v7x
topology: tpu7x:2x2x1
jax: 0.10.0
libtpu: 0.0.40
codegen_flags: <defaults>
</compile_context>

<pallas_src>
import jax
import jax.numpy as jnp
from jax import lax
from jax.experimental import pallas as pl
from jax.experimental.pallas import tpu as pltpu

N = 9            # sudoku digit count
NN = N * N       # 81 cells
H1 = 100         # hidden width of l1


def _sudoku_kernel(nempty_ref,                 # SMEM (bts,) int32   scalar prefetch
                   cm_ref,                     # VMEM (3, 81, 81)    bf16 constraint mask
                   w1_ref,                     # VMEM (3, 9, 100)    bf16 W1^T split by type
                   w2_ref,                     # VMEM (100, 9)       bf16 W2^T
                   x_ref,                      # VMEM (1, 81, 9)     f32 input board
                   x_out_ref, xp_out_ref,      # VMEM (1, 81, 9)     f32 outputs
                   x_sc, xp_sc):               # VMEM (81, 9)        f32 scratch state
    b = pl.program_id(0)
    n_iters = nempty_ref[b]                    # empty cells on this board

    x0 = x_ref[0]
    x_sc[...] = x0
    xp_sc[...] = x0

    # Hoisted loop-invariant constants / small weight loads (JAX does not CSE
    # broadcast_in_dim, so build the iota key once, outside the loop).
    flat_iota = (lax.broadcasted_iota(jnp.int32, (NN, N), 0) * N
                 + lax.broadcasted_iota(jnp.int32, (NN, N), 1))        # cell*9 + digit
    w1 = [w1_ref[t] for t in range(3)]          # 3 x (9, 100) bf16
    w2 = w2_ref[...]                            # (100, 9) bf16

    def body(a, carry):
        x = x_sc[...]                           # (81, 9) f32, exact 0/1
        xp = xp_sc[...]

        # h_pre = sum_t cm[t] @ (x @ w1[t]): the (81,81) contraction now has
        # 100 live output lanes; bf16 operands, f32 accumulation.
        xb = x.astype(jnp.bfloat16)
        h_pre = jnp.zeros((NN, H1), dtype=jnp.float32)
        for t in range(3):
            p_t = jnp.dot(xb, w1[t], preferred_element_type=jnp.float32)      # (81, 100)
            h_pre = h_pre + jnp.dot(cm_ref[t], p_t.astype(jnp.bfloat16),
                                    preferred_element_type=jnp.float32)       # (81, 100)

        h = jnp.maximum(h_pre, 0.0)                                           # ReLU
        y = jnp.dot(h.astype(jnp.bfloat16), w2,
                    preferred_element_type=jnp.float32)                       # (81, 9)

        # softmax over the digit dimension
        y = y - jnp.max(y, axis=-1, keepdims=True)
        e = jnp.exp(y)
        s_full = e / jnp.sum(e, axis=-1, keepdims=True)

        # empty cells: x holds exact f32 0/1 values, so exact compare is safe
        empty = jnp.sum(x, axis=-1, keepdims=True) == 0.0                     # (81, 1)

        # x_pred[empty] = softmax prediction
        xp_sc[...] = jnp.where(empty, s_full, xp)

        # Most confident (cell, digit) among empty cells via a single flat
        # first-occurrence key (matches torch argmax tie rule).  Inside this
        # loop at least one empty cell always exists and softmax values are
        # strictly positive, so the winner is guaranteed to be an empty cell.
        s = jnp.where(empty, s_full, 0.0)
        gmax = jnp.max(s)
        flat_win = jnp.min(jnp.where(s == gmax, flat_iota, jnp.int32(NN * N)))
        x_sc[...] = jnp.where(flat_iota == flat_win, 1.0, x)
        return carry

    # Each iteration fills exactly one empty cell, so n_iters iterations fill
    # the whole board; the torch code's extra (batch-max) iterations would be
    # no-ops, hence identical results.
    lax.fori_loop(0, n_iters, body, 0)

    x_out_ref[0] = x_sc[...]
    xp_out_ref[0] = xp_sc[...]


@jax.jit
def sudoku_rnn_forward(cm3, w1t3, w2t, x):
    """Full SudokuRNN.forward: returns (x_pred, x)."""
    x = x.astype(jnp.float32)
    bts = x.shape[0]
    # Per-board number of empty cells, computed on device (no host sync) and
    # handed to the kernel through scalar prefetch.
    n_empty = jnp.sum(jnp.sum(x, axis=2) == 0.0, axis=1).astype(jnp.int32)

    x_final, x_pred = pl.pallas_call(
        _sudoku_kernel,
        out_shape=(jax.ShapeDtypeStruct((bts, NN, N), jnp.float32),
                   jax.ShapeDtypeStruct((bts, NN, N), jnp.float32)),
        grid_spec=pltpu.PrefetchScalarGridSpec(
            num_scalar_prefetch=1,
            grid=(bts,),
            in_specs=[
                pl.BlockSpec((3, NN, NN), lambda b, ne: (0, 0, 0)),   # constraint mask
                pl.BlockSpec((3, N, H1), lambda b, ne: (0, 0, 0)),    # W1^T split by type
                pl.BlockSpec((H1, N), lambda b, ne: (0, 0)),          # W2^T
                pl.BlockSpec((1, NN, N), lambda b, ne: (b, 0, 0)),    # x
            ],
            out_specs=[
                pl.BlockSpec((1, NN, N), lambda b, ne: (b, 0, 0)),    # final board x
                pl.BlockSpec((1, NN, N), lambda b, ne: (b, 0, 0)),    # x_pred
            ],
            scratch_shapes=[pltpu.VMEM((NN, N), jnp.float32),
                            pltpu.VMEM((NN, N), jnp.float32)],
        ),
        compiler_params=pltpu.CompilerParams(
            dimension_semantics=("parallel",)),   # keeps both TCs busy on v7x
    )(n_empty, cm3, w1t3, w2t, x)
    return x_pred, x_final


def build_constraint_mask():
    """Standard sudoku constraint mask, shape (81, 3, 81): row / col / box."""
    cells = jnp.arange(NN)
    rows = cells // N
    cols = cells % N
    boxes = (rows // 3) * 3 + (cols // 3)
    row_m = (rows[:, None] == rows[None, :]).astype(jnp.float32)
    col_m = (cols[:, None] == cols[None, :]).astype(jnp.float32)
    box_m = (boxes[:, None] == boxes[None, :]).astype(jnp.float32)
    return jnp.stack([row_m, col_m, box_m], axis=1)   # (81, 3, 81)


if __name__ == "__main__":
    key = jax.random.PRNGKey(0)
    k_w1, k_w2, k_dig, k_fill = jax.random.split(key, 4)

    # Deterministic parameter init (nn.Linear-like uniform, bias=False).
    in1, in2 = 3 * N, H1
    w1 = jax.random.uniform(k_w1, (H1, 3 * N), jnp.float32,
                            -1.0 / jnp.sqrt(in1), 1.0 / jnp.sqrt(in1))   # l1.weight
    w2 = jax.random.uniform(k_w2, (N, H1), jnp.float32,
                            -1.0 / jnp.sqrt(in2), 1.0 / jnp.sqrt(in2))   # l2.weight

    # Kernel-friendly bf16 parameter layouts (f32 accumulation in-kernel).
    cm3 = jnp.transpose(build_constraint_mask(), (1, 0, 2)).astype(jnp.bfloat16)  # (3,81,81)
    w1t3 = jnp.transpose(w1).reshape(3, N, H1).astype(jnp.bfloat16)               # (3,9,100)
    w2t = jnp.transpose(w2).astype(jnp.bfloat16)                                  # (100,9)

    # Deterministic partially-filled boards: batch=2, 81 cells, 9 digits (one-hot).
    bts = 2
    digits = jax.random.randint(k_dig, (bts, NN), 0, N)
    filled = jax.random.uniform(k_fill, (bts, NN)) < 0.9      # ~10% empty cells
    x0 = jax.nn.one_hot(digits, N, dtype=jnp.float32) * filled[..., None].astype(jnp.float32)

    x_pred, x_final = sudoku_rnn_forward(cm3, w1t3, w2t, x0)
    x_pred = jax.block_until_ready(x_pred)
    x_final = jax.block_until_ready(x_final)

    # Sanity: after the loop every cell holds exactly one digit, and x_pred
    # rows are probability-like (original one-hot or softmax, sum ~ 1).
    assert x_pred.shape == (bts, NN, N) and x_final.shape == (bts, NN, N)
    assert bool(jnp.all(jnp.sum(x_final, axis=-1) == 1.0))
    assert bool(jnp.all(jnp.isfinite(x_pred)))
    assert bool(jnp.all(jnp.abs(jnp.sum(x_pred, axis=-1) - 1.0) < 1e-3))

    print("KERNEL_OK")
</pallas_src>

<mosaic_0001>
module attributes {stable_mosaic.version = 11 : i64} {
  func.func @_sudoku_kernel(%arg0: i32, %arg1: memref<2xi32, #tpu.memory_space<smem>>, %arg2: memref<3x81x81xbf16, #tpu.memory_space<vmem>>, %arg3: memref<3x9x100xbf16, #tpu.memory_space<vmem>>, %arg4: memref<100x9xbf16, #tpu.memory_space<vmem>>, %arg5: memref<1x81x9xf32, #tpu.memory_space<vmem>>, %arg6: memref<1x81x9xf32, #tpu.memory_space<vmem>>, %arg7: memref<1x81x9xf32, #tpu.memory_space<vmem>>, %arg8: memref<81x9xf32, #tpu.memory_space<vmem>>, %arg9: memref<81x9xf32, #tpu.memory_space<vmem>>) attributes {dimension_semantics = [#tpu.dimension_semantics<parallel>], iteration_bounds = array<i64: 2>, scalar_prefetch = 1 : i64, scratch_operands = 2 : i64, tpu.core_type = #tpu.core_type<tc>, window_params = [{pipeline_mode = #tpu.pipeline_mode<synchronous>, transform_indices = @transform_0, window_bounds = array<i64: 3, 81, 81>}, {pipeline_mode = #tpu.pipeline_mode<synchronous>, transform_indices = @transform_1, window_bounds = array<i64: 3, 9, 100>}, {pipeline_mode = #tpu.pipeline_mode<synchronous>, transform_indices = @transform_2, window_bounds = array<i64: 100, 9>}, {transform_indices = @transform_3, window_bounds = array<i64: 1, 81, 9>}, {transform_indices = @transform_4, window_bounds = array<i64: 1, 81, 9>}, {transform_indices = @transform_5, window_bounds = array<i64: 1, 81, 9>}]} {
    %0 = arith.index_cast %arg0 : i32 to index
    %1 = memref.load %arg1[%0] : memref<2xi32, #tpu.memory_space<smem>>
    %c0 = arith.constant 0 : index
    %c0_0 = arith.constant 0 : index
    %c0_1 = arith.constant 0 : index
    %2 = vector.load %arg5[%c0, %c0_0, %c0_1] : memref<1x81x9xf32, #tpu.memory_space<vmem>>, vector<1x81x9xf32>
    %3 = vector.shape_cast %2 : vector<1x81x9xf32> to vector<81x9xf32>
    %c0_2 = arith.constant 0 : index
    %c0_3 = arith.constant 0 : index
    %4 = vector.load %arg8[%c0_2, %c0_3] : memref<81x9xf32, #tpu.memory_space<vmem>>, vector<81x9xf32>
    tpu.vector_store %arg8[%c0_2, %c0_3], %3 {strides = array<i32>} : memref<81x9xf32, #tpu.memory_space<vmem>>, vector<81x9xf32>,
    %c0_4 = arith.constant 0 : index
    %c0_5 = arith.constant 0 : index
    %5 = vector.load %arg9[%c0_4, %c0_5] : memref<81x9xf32, #tpu.memory_space<vmem>>, vector<81x9xf32>
    tpu.vector_store %arg9[%c0_4, %c0_5], %3 {strides = array<i32>} : memref<81x9xf32, #tpu.memory_space<vmem>>, vector<81x9xf32>,
    %6 = tpu.iota {dimensions = array<i32: 0>} : vector<81x9xi32>
    %c9_i32 = arith.constant 9 : i32
    %7 = vector.broadcast %c9_i32 : i32 to vector<81x9xi32>
    %8 = arith.muli %6, %7 : vector<81x9xi32>
    %9 = tpu.iota {dimensions = array<i32: 1>} : vector<81x9xi32>
    %10 = arith.addi %8, %9 : vector<81x9xi32>
    %c0_6 = arith.constant 0 : index
    %c0_7 = arith.constant 0 : index
    %c0_8 = arith.constant 0 : index
    %11 = vector.load %arg3[%c0_6, %c0_7, %c0_8] : memref<3x9x100xbf16, #tpu.memory_space<vmem>>, vector<1x9x100xbf16>
    %12 = vector.shape_cast %11 : vector<1x9x100xbf16> to vector<9x100xbf16>
    %c1 = arith.constant 1 : index
    %c0_9 = arith.constant 0 : index
    %c0_10 = arith.constant 0 : index
    %13 = vector.load %arg3[%c1, %c0_9, %c0_10] : memref<3x9x100xbf16, #tpu.memory_space<vmem>>, vector<1x9x100xbf16>
    %14 = vector.shape_cast %13 : vector<1x9x100xbf16> to vector<9x100xbf16>
    %c2 = arith.constant 2 : index
    %c0_11 = arith.constant 0 : index
    %c0_12 = arith.constant 0 : index
    %15 = vector.load %arg3[%c2, %c0_11, %c0_12] : memref<3x9x100xbf16, #tpu.memory_space<vmem>>, vector<1x9x100xbf16>
    %16 = vector.shape_cast %15 : vector<1x9x100xbf16> to vector<9x100xbf16>
    %c0_13 = arith.constant 0 : index
    %c0_14 = arith.constant 0 : index
    %17 = vector.load %arg4[%c0_13, %c0_14] : memref<100x9xbf16, #tpu.memory_space<vmem>>, vector<100x9xbf16>
    %c0_i32 = arith.constant 0 : i32
    %c0_i32_15 = arith.constant 0 : i32
    %18 = arith.subi %1, %c0_i32_15 : i32
    %19 = arith.addi %c0_i32_15, %18 : i32
    %c1_i32 = arith.constant 1 : i32
    scf.for %arg10 = %c0_i32_15 to %19 step %c1_i32  : i32 {
      %c0_26 = arith.constant 0 : index
      %c0_27 = arith.constant 0 : index
      %28 = vector.load %arg8[%c0_26, %c0_27] : memref<81x9xf32, #tpu.memory_space<vmem>>, vector<81x9xf32>
      %c0_28 = arith.constant 0 : index
      %c0_29 = arith.constant 0 : index
      %29 = vector.load %arg9[%c0_28, %c0_29] : memref<81x9xf32, #tpu.memory_space<vmem>>, vector<81x9xf32>
      %30 = arith.truncf %28 : vector<81x9xf32> to vector<81x9xbf16>
      %cst = arith.constant 0.000000e+00 : f32
      %31 = vector.broadcast %cst : f32 to vector<81x100xf32>
      %cst_30 = arith.constant dense<0.000000e+00> : vector<81x100xf32>
      %32 = tpu.matmul %30, %12, %cst_30 {dimension_numbers = #tpu.dot_dimension_numbers<[1], [0], [0], [1], [0, 0, 1, 1], [], []>} : vector<81x9xbf16>, vector<9x100xbf16>, vector<81x100xf32> -> vector<81x100xf32>
      %c0_31 = arith.constant 0 : index
      %c0_32 = arith.constant 0 : index
      %c0_33 = arith.constant 0 : index
      %33 = vector.load %arg2[%c0_31, %c0_32, %c0_33] : memref<3x81x81xbf16, #tpu.memory_space<vmem>>, vector<1x81x81xbf16>
      %34 = vector.shape_cast %33 : vector<1x81x81xbf16> to vector<81x81xbf16>
      %35 = arith.truncf %32 : vector<81x100xf32> to vector<81x100xbf16>
      %cst_34 = arith.constant dense<0.000000e+00> : vector<81x100xf32>
      %36 = tpu.matmul %34, %35, %cst_34 {dimension_numbers = #tpu.dot_dimension_numbers<[1], [0], [0], [1], [0, 0, 1, 1], [], []>} : vector<81x81xbf16>, vector<81x100xbf16>, vector<81x100xf32> -> vector<81x100xf32>
      %37 = arith.addf %31, %36 : vector<81x100xf32>
      %cst_35 = arith.constant dense<0.000000e+00> : vector<81x100xf32>
      %38 = tpu.matmul %30, %14, %cst_35 {dimension_numbers = #tpu.dot_dimension_numbers<[1], [0], [0], [1], [0, 0, 1, 1], [], []>} : vector<81x9xbf16>, vector<9x100xbf16>, vector<81x100xf32> -> vector<81x100xf32>
      %c1_36 = arith.constant 1 : index
      %c0_37 = arith.constant 0 : index
      %c0_38 = arith.constant 0 : index
      %39 = vector.load %arg2[%c1_36, %c0_37, %c0_38] : memref<3x81x81xbf16, #tpu.memory_space<vmem>>, vector<1x81x81xbf16>
      %40 = vector.shape_cast %39 : vector<1x81x81xbf16> to vector<81x81xbf16>
      %41 = arith.truncf %38 : vector<81x100xf32> to vector<81x100xbf16>
      %cst_39 = arith.constant dense<0.000000e+00> : vector<81x100xf32>
      %42 = tpu.matmul %40, %41, %cst_39 {dimension_numbers = #tpu.dot_dimension_numbers<[1], [0], [0], [1], [0, 0, 1, 1], [], []>} : vector<81x81xbf16>, vector<81x100xbf16>, vector<81x100xf32> -> vector<81x100xf32>
      %43 = arith.addf %37, %42 : vector<81x100xf32>
      %cst_40 = arith.constant dense<0.000000e+00> : vector<81x100xf32>
      %44 = tpu.matmul %30, %16, %cst_40 {dimension_numbers = #tpu.dot_dimension_numbers<[1], [0], [0], [1], [0, 0, 1, 1], [], []>} : vector<81x9xbf16>, vector<9x100xbf16>, vector<81x100xf32> -> vector<81x100xf32>
      %c2_41 = arith.constant 2 : index
      %c0_42 = arith.constant 0 : index
      %c0_43 = arith.constant 0 : index
      %45 = vector.load %arg2[%c2_41, %c0_42, %c0_43] : memref<3x81x81xbf16, #tpu.memory_space<vmem>>, vector<1x81x81xbf16>
      %46 = vector.shape_cast %45 : vector<1x81x81xbf16> to vector<81x81xbf16>
      %47 = arith.truncf %44 : vector<81x100xf32> to vector<81x100xbf16>
      %cst_44 = arith.constant dense<0.000000e+00> : vector<81x100xf32>
      %48 = tpu.matmul %46, %47, %cst_44 {dimension_numbers = #tpu.dot_dimension_numbers<[1], [0], [0], [1], [0, 0, 1, 1], [], []>} : vector<81x81xbf16>, vector<81x100xbf16>, vector<81x100xf32> -> vector<81x100xf32>
      %49 = arith.addf %43, %48 : vector<81x100xf32>
      %cst_45 = arith.constant 0.000000e+00 : f32
      %50 = vector.broadcast %cst_45 : f32 to vector<81x100xf32>
      %51 = arith.maximumf %49, %50 : vector<81x100xf32>
      %52 = arith.truncf %51 : vector<81x100xf32> to vector<81x100xbf16>
      %cst_46 = arith.constant dense<0.000000e+00> : vector<81x9xf32>
      %53 = tpu.matmul %52, %17, %cst_46 {dimension_numbers = #tpu.dot_dimension_numbers<[1], [0], [0], [1], [0, 0, 1, 1], [], []>} : vector<81x100xbf16>, vector<100x9xbf16>, vector<81x9xf32> -> vector<81x9xf32>
      %cst_47 = arith.constant dense<0xFF800000> : vector<81xf32>
      %54 = vector.multi_reduction <maximumf>, %53, %cst_47 [1] : vector<81x9xf32> to vector<81xf32>
      %55 = vector.shape_cast %54 : vector<81xf32> to vector<81x1xf32>
      %56 = vector.broadcast %55 : vector<81x1xf32> to vector<81x9xf32>
      %57 = arith.subf %53, %56 : vector<81x9xf32>
      %58 = math.exp %57 : vector<81x9xf32>
      %cst_48 = arith.constant dense<0.000000e+00> : vector<81xf32>
      %59 = vector.multi_reduction <add>, %58, %cst_48 [1] : vector<81x9xf32> to vector<81xf32>
      %60 = vector.shape_cast %59 : vector<81xf32> to vector<81x1xf32>
      %61 = vector.broadcast %60 : vector<81x1xf32> to vector<81x9xf32>
      %62 = arith.divf %58, %61 : vector<81x9xf32>
      %cst_49 = arith.constant dense<0.000000e+00> : vector<81xf32>
      %63 = vector.multi_reduction <add>, %28, %cst_49 [1] : vector<81x9xf32> to vector<81xf32>
      %64 = vector.shape_cast %63 : vector<81xf32> to vector<81x1xf32>
      %cst_50 = arith.constant 0.000000e+00 : f32
      %65 = vector.broadcast %cst_50 : f32 to vector<81x1xf32>
      %66 = arith.cmpf oeq, %64, %65 : vector<81x1xf32>
      %67 = vector.shape_cast %66 : vector<81x1xi1> to vector<81x1xi1>
      %68 = vector.broadcast %67 : vector<81x1xi1> to vector<81x9xi1>
      %69 = arith.select %68, %62, %29 : vector<81x9xi1>, vector<81x9xf32>
      %c0_51 = arith.constant 0 : index
      %c0_52 = arith.constant 0 : index
      %70 = vector.load %arg9[%c0_51, %c0_52] : memref<81x9xf32, #tpu.memory_space<vmem>>, vector<81x9xf32>
      tpu.vector_store %arg9[%c0_51, %c0_52], %69 {strides = array<i32>} : memref<81x9xf32, #tpu.memory_space<vmem>>, vector<81x9xf32>,
      %cst_53 = arith.constant 0.000000e+00 : f32
      %71 = vector.shape_cast %66 : vector<81x1xi1> to vector<81x1xi1>
      %72 = vector.broadcast %71 : vector<81x1xi1> to vector<81x9xi1>
      %73 = vector.broadcast %cst_53 : f32 to vector<81x9xf32>
      %74 = arith.select %72, %62, %73 : vector<81x9xi1>, vector<81x9xf32>
      %75 = vector.shape_cast %74 : vector<81x9xf32> to vector<1x81x9xf32>
      %cst_54 = arith.constant dense<0xFF800000> : vector<1xf32>
      %76 = vector.multi_reduction <maximumf>, %75, %cst_54 [1, 2] : vector<1x81x9xf32> to vector<1xf32>
      %77 = vector.shape_cast %76 : vector<1xf32> to vector<1x1x1xf32>
      %78 = vector.extract %77[0, 0, 0] : f32 from vector<1x1x1xf32>
      %79 = vector.broadcast %78 : f32 to vector<81x9xf32>
      %80 = arith.cmpf oeq, %74, %79 : vector<81x9xf32>
      %c729_i32 = arith.constant 729 : i32
      %81 = vector.broadcast %c729_i32 : i32 to vector<81x9xi32>
      %82 = arith.select %80, %10, %81 : vector<81x9xi1>, vector<81x9xi32>
      %83 = vector.shape_cast %82 : vector<81x9xi32> to vector<1x81x9xi32>
      %cst_55 = arith.constant dense<2147483647> : vector<1xi32>
      %84 = vector.multi_reduction <minsi>, %83, %cst_55 [1, 2] : vector<1x81x9xi32> to vector<1xi32>
      %85 = vector.shape_cast %84 : vector<1xi32> to vector<1x1x1xi32>
      %86 = vector.extract %85[0, 0, 0] : i32 from vector<1x1x1xi32>
      %87 = vector.broadcast %86 : i32 to vector<81x9xi32>
      %88 = arith.cmpi eq, %10, %87 : vector<81x9xi32>
      %cst_56 = arith.constant 1.000000e+00 : f32
      %89 = vector.broadcast %cst_56 : f32 to vector<81x9xf32>
      %90 = arith.select %88, %89, %28 : vector<81x9xi1>, vector<81x9xf32>
      %c0_57 = arith.constant 0 : index
      %c0_58 = arith.constant 0 : index
      %91 = vector.load %arg8[%c0_57, %c0_58] : memref<81x9xf32, #tpu.memory_space<vmem>>, vector<81x9xf32>
      tpu.vector_store %arg8[%c0_57, %c0_58], %90 {strides = array<i32>} : memref<81x9xf32, #tpu.memory_space<vmem>>, vector<81x9xf32>,
    }
    %c0_16 = arith.constant 0 : index
    %c0_17 = arith.constant 0 : index
    %20 = vector.load %arg8[%c0_16, %c0_17] : memref<81x9xf32, #tpu.memory_space<vmem>>, vector<81x9xf32>
    %c0_18 = arith.constant 0 : index
    %c0_19 = arith.constant 0 : index
    %c0_20 = arith.constant 0 : index
    %21 = vector.load %arg6[%c0_18, %c0_19, %c0_20] : memref<1x81x9xf32, #tpu.memory_space<vmem>>, vector<1x81x9xf32>
    %22 = vector.shape_cast %21 : vector<1x81x9xf32> to vector<81x9xf32>
    %23 = vector.shape_cast %20 : vector<81x9xf32> to vector<1x81x9xf32>
    tpu.vector_store %arg6[%c0_18, %c0_19, %c0_20], %23 {strides = array<i32>} : memref<1x81x9xf32, #tpu.memory_space<vmem>>, vector<1x81x9xf32>,
    %c0_21 = arith.constant 0 : index
    %c0_22 = arith.constant 0 : index
    %24 = vector.load %arg9[%c0_21, %c0_22] : memref<81x9xf32, #tpu.memory_space<vmem>>, vector<81x9xf32>
    %c0_23 = arith.constant 0 : index
    %c0_24 = arith.constant 0 : index
    %c0_25 = arith.constant 0 : index
    %25 = vector.load %arg7[%c0_23, %c0_24, %c0_25] : memref<1x81x9xf32, #tpu.memory_space<vmem>>, vector<1x81x9xf32>
    %26 = vector.shape_cast %25 : vector<1x81x9xf32> to vector<81x9xf32>
    %27 = vector.shape_cast %24 : vector<81x9xf32> to vector<1x81x9xf32>
    tpu.vector_store %arg7[%c0_23, %c0_24, %c0_25], %27 {strides = array<i32>} : memref<1x81x9xf32, #tpu.memory_space<vmem>>, vector<1x81x9xf32>,
    return
  }
  func.func @transform_0(%arg0: i32, %arg1: memref<2xi32, #tpu.memory_space<smem>>) -> (i32, i32, i32) {
    %c0_i32 = arith.constant 0 : i32
    %c0_i32_0 = arith.constant 0 : i32
    %c0_i32_1 = arith.constant 0 : i32
    %c0_i32_2 = arith.constant 0 : i32
    return %c0_i32, %c0_i32_0, %c0_i32_1 : i32, i32, i32
  }
  func.func @transform_1(%arg0: i32, %arg1: memref<2xi32, #tpu.memory_space<smem>>) -> (i32, i32, i32) {
    %c0_i32 = arith.constant 0 : i32
    %c0_i32_0 = arith.constant 0 : i32
    %c0_i32_1 = arith.constant 0 : i32
    %c0_i32_2 = arith.constant 0 : i32
    return %c0_i32, %c0_i32_0, %c0_i32_1 : i32, i32, i32
  }
  func.func @transform_2(%arg0: i32, %arg1: memref<2xi32, #tpu.memory_space<smem>>) -> (i32, i32) {
    %c0_i32 = arith.constant 0 : i32
    %c0_i32_0 = arith.constant 0 : i32
    %c0_i32_1 = arith.constant 0 : i32
    return %c0_i32, %c0_i32_0 : i32, i32
  }
  func.func @transform_3(%arg0: i32, %arg1: memref<2xi32, #tpu.memory_space<smem>>) -> (i32, i32, i32) {
    %c0_i32 = arith.constant 0 : i32
    %c0_i32_0 = arith.constant 0 : i32
    %c0_i32_1 = arith.constant 0 : i32
    return %arg0, %c0_i32, %c0_i32_0 : i32, i32, i32
  }
  func.func @transform_4(%arg0: i32, %arg1: memref<2xi32, #tpu.memory_space<smem>>) -> (i32, i32, i32) {
    %c0_i32 = arith.constant 0 : i32
    %c0_i32_0 = arith.constant 0 : i32
    %c0_i32_1 = arith.constant 0 : i32
    return %arg0, %c0_i32, %c0_i32_0 : i32, i32, i32
  }
  func.func @transform_5(%arg0: i32, %arg1: memref<2xi32, #tpu.memory_space<smem>>) -> (i32, i32, i32) {
    %c0_i32 = arith.constant 0 : i32
    %c0_i32_0 = arith.constant 0 : i32
    %c0_i32_1 = arith.constant 0 : i32
    return %arg0, %c0_i32, %c0_i32_0 : i32, i32, i32
  }
}

</mosaic_0001>

<bundles_post_ra>
// kernel: sudoku_rnn_forward.1
= control target key start
LH: loop header
LB: loop body
LE: loop exit
PB: predicated region body
PF: predicated region fallthrough
CT: control target
= control target key end

     0   :  { %s2920_s0 = inlined_call_operand.vmem [shape: s32[2], index: 0, kind: input, shape index: {}]   ;;  %s2921_s1 = inlined_call_operand.vmem [shape: bf16[3,81,81], index: 1, kind: input, shape index: {}]   ;;  %s2922_s2 = inlined_call_operand.vmem [shape: bf16[3,9,100], index: 2, kind: input, shape index: {}]   ;;  %s2923_s3 = inlined_call_operand.vmem [shape: bf16[100,9], index: 3, kind: input, shape index: {}]   ;;  %s2924_s4 = inlined_call_operand.vmem [shape: f32[2,81,9], index: 4, kind: input, shape index: {}]   ;;  %s2925_s5 = inlined_call_operand.vmem [shape: f32[2,81,9], index: 5, kind: output, shape index: {0}]   ;;  %s2926_s6 = inlined_call_operand.vmem [shape: f32[2,81,9], index: 6, kind: output, shape index: {1}]  }
   0x1   :  { %s12_s23 = sshll.u32 %s2920_s0, 4  ;;  %s13_s23 = int_to_ptr.vmem [resolvable:$true] %s12_s23 }
   0x2   :  { %s2211_s24 = scalar_lea.vmem %s13_s23, 16  ;;  %p2216_p1 = scmp.lt.s32.totalorder %s13_s23, %s13_s23 }
   0x3   :  { %p2212_p0 = scmp.ne.s32.totalorder %s13_s23, %s2211_s24  ;;  %p2217_p2 = scmp.lt.s32.totalorder %s2211_s24, %s2211_s24 }
   0x5   :  { %p2218_p3 = por %p2217_p2, %p2216_p1 }
   0x7   :  { %p2219_p4 = pnand %p2218_p3, %p2212_p0 }
   0x9   :  { %2222 = shalt.err (!%p2219_p4)  }
   0xa   :  { %s2241_s25 = smov [#allocation5]  }
   0xb   :  { %15 = dma.vmem_to_smem %s13_s23, 16, %s2241_s25, [#allocation4] }
   0xc   :  { %2231 = dma.done.wait [#allocation4], 16 }
   0xd   :  { %2232 = vsyncadd [#allocation4], 4294967280 }
   0xe   :  { %17 = sfence }
   0xf   :  { %s2282_s26 = smov 0  }
  0x10 LB: > { %s1772_s0 = sadd.s32 4294967295, %s2235_s26   ;;  %p1776_p5 = scmp.ge.s32.totalorder %s2235_s26, 1  ;;  %s2235_s26 = sphi %s2282_s26, %s23_s26  }
  0x11   : > { %p197_p6 = scmp.lt.s32.totalorder %s2235_s26, 3 }
  0x13   : > { %p198_p7 = pnand %p1776_p5, %p197_p6 }
  0x15   : > { %201 = sbr.rel (%p198_p7) target bundleno = 1737 (0x6c9), region = 36 }
  0x1c   : > { %p230_p8 = scmp.lt.s32.totalorder %s1772_s0, 1  ;;  %s2290_s27 = sld [smem:[#allocation5 + %s1772_s0]]  ;;  %v282_v0 = vlaneseq  ;;  %v2295_v1 = vld [vmem:[%s2922_s2] sm:$0xf]  ;;  %v2300_v2 = vld [vmem:[%s2922_s2 + $0x4] sm:$0x1] }
  0x1d   : > { %2927 = vst [vmem:[#allocation7_spill] sm:$0xff] %v2295_v1  ;;  %v2305_v3 = vld [vmem:[%s2922_s2 + $0x8] sm:$0xf]  ;;  %v2310_v4 = vld [vmem:[%s2922_s2 + $0xc] sm:$0x1]  ;;  %vm258_vm0 = vcmask 72704  }
  0x1e   : > { %s2930_s0 = smov (!%p230_p8, %s1772_s0), 1  ;;  %v283_v5 = vshrl.u32 %v282_v0, 7  ;;  %v2312_v6 = vand.u32 127, %v282_v0  ;;  %v2317_v7 = vld [vmem:[%s2922_s2 + $0x10] sm:$0xf]  ;;  %vm269_vm1 = vcmask 65536  }
  0x1f   : > { %v2322_v8 = vld [vmem:[%s2922_s2 + $0x14] sm:$0x1]  ;;  %v2327_v9 = vld [vmem:[%s2923_s3] sm:$0xf]  ;;  %v2332_v10 = vld [vmem:[%s2923_s3 + $0x4] sm:$0xf] }
  0x20   : > { %s2114_s20 = smul.u32 88, %s2930_s0  ;;  %v284_v11 = vadd.s32 8, %v283_v5  ;;  %v285_v12 = vadd.s32 16, %v283_v5  ;;  %v286_v13 = vadd.s32 24, %v283_v5  ;;  %v287_v14 = vadd.s32 32, %v283_v5 }
  0x21   : > { %v288_v15 = vadd.s32 40, %v283_v5  ;;  %v289_v16 = vadd.s32 48, %v283_v5  ;;  %v290_v17 = vadd.s32 56, %v283_v5  ;;  %v2337_v18 = vld [vmem:[%s2923_s3 + $0x8] sm:$0xf]  ;;  %v291_v19 = vadd.s32 64, %v283_v5 }
  0x22   : > { %s2342_s25 = scalar_lea.vmem %s2924_s4, %s2114_s20  ;;  %s2347_s29 = scalar_lea.vmem %s2925_s5, %s2114_s20  ;;  %v292_v20 = vadd.s32 72, %v283_v5  ;;  %v294_v21 = vmul.u32 9, %v283_v5  ;;  %v295_v22 = vmul.u32 9, %v284_v11  ;;  %v2352_v23 = vld [vmem:[%s2923_s3 + $0xc] sm:$0xf]  ;;  %v293_v27 = vadd.s32 80, %v283_v5 }
  0x23   : > { %s2357_s10 = scalar_lea.vmem %s2926_s6, %s2114_s20  ;;  %v247_v24 = vld [vmem:[%s2342_s25] sm:$0xff]  ;;  %v248_v25 = vld [vmem:[%s2342_s25 + $0x8] sm:$0xff]  ;;  %v249_v26 = vld [vmem:[%s2342_s25 + $0x10] sm:$0xff]  ;;  %v296_v28 = vmul.u32 9, %v285_v12  ;;  %v297_v29 = vmul.u32 9, %v286_v13  ;;  %p1784_p9 = scmp.le.s32.totalorder %s2290_s27, 0 }
  0x24   : > { %259 = vst.msk [vmem:[#allocation2] sm:$0xff] %vm258_vm0, %v247_v24  ;;  %271 = vst.msk [vmem:[#allocation3] sm:$0xff] %vm258_vm0, %v247_v24  ;;  %v250_v30 = vld [vmem:[%s2342_s25 + $0x18] sm:$0xff]  ;;  %v251_v31 = vld [vmem:[%s2342_s25 + $0x20] sm:$0xff]  ;;  %v298_v33 = vmul.u32 9, %v287_v14  ;;  %v299_v34 = vmul.u32 9, %v288_v15  ;;  %v2372_v35 = vadd.s32 %v2312_v6, %v294_v21  ;;  %v2375_v36 = vadd.s32 %v2312_v6, %v295_v22 }
  0x25   : > { %260 = vst.msk [vmem:[#allocation2 + $0x8] sm:$0xff] %vm258_vm0, %v248_v25  ;;  %272 = vst.msk [vmem:[#allocation3 + $0x8] sm:$0xff] %vm258_vm0, %v248_v25  ;;  %v252_v32 = vld [vmem:[%s2342_s25 + $0x28] sm:$0xff]  ;;  %v253_v37 = vld [vmem:[%s2342_s25 + $0x30] sm:$0xff]  ;;  %v300_v40 = vmul.u32 9, %v289_v16  ;;  %v301_v41 = vmul.u32 9, %v290_v17  ;;  %v2387_v42 = vadd.s32 %v2312_v6, %v296_v28  ;;  %v2390_v43 = vadd.s32 %v2312_v6, %v297_v29 }
  0x26   : > { %261 = vst.msk [vmem:[#allocation2 + $0x10] sm:$0xff] %vm258_vm0, %v249_v26  ;;  %273 = vst.msk [vmem:[#allocation3 + $0x10] sm:$0xff] %vm258_vm0, %v249_v26  ;;  %v254_v38 = vld [vmem:[%s2342_s25 + $0x38] sm:$0xff]  ;;  %v255_v39 = vld [vmem:[%s2342_s25 + $0x40] sm:$0xff]  ;;  %v302_v46 = vmul.u32 9, %v291_v19  ;;  %v303_v47 = vmul.u32 9, %v292_v20  ;;  %v2401_v48 = vadd.s32 %v2312_v6, %v298_v33  ;;  %v2404_v49 = vadd.s32 %v2312_v6, %v299_v34 }
  0x27   : > { %262 = vst.msk [vmem:[#allocation2 + $0x18] sm:$0xff] %vm258_vm0, %v250_v30  ;;  %274 = vst.msk [vmem:[#allocation3 + $0x18] sm:$0xff] %vm258_vm0, %v250_v30  ;;  %v256_v44 = vld [vmem:[%s2342_s25 + $0x48] sm:$0xff]  ;;  %v257_v45 = vld [vmem:[%s2342_s25 + $0x50] sm:$0x1]  ;;  %v304_v50 = vmul.u32 9, %v293_v27  ;;  %v2411_v51 = vadd.s32 %v2312_v6, %v300_v40  ;;  %v2414_v52 = vadd.s32 %v2312_v6, %v301_v41 }
  0x28   : > { %263 = vst.msk [vmem:[#allocation2 + $0x20] sm:$0xff] %vm258_vm0, %v251_v31  ;;  %275 = vst.msk [vmem:[#allocation3 + $0x20] sm:$0xff] %vm258_vm0, %v251_v31  ;;  %v2419_v53 = vld [vmem:[%s2923_s3 + $0x10] sm:$0xf]  ;;  %v2424_v54 = vld [vmem:[%s2923_s3 + $0x14] sm:$0xf]  ;;  %v2427_v55 = vadd.s32 %v2312_v6, %v302_v46  ;;  %v2430_v56 = vadd.s32 %v2312_v6, %v303_v47 }
  0x29   : > { %264 = vst.msk [vmem:[#allocation2 + $0x28] sm:$0xff] %vm258_vm0, %v252_v32  ;;  %276 = vst.msk [vmem:[#allocation3 + $0x28] sm:$0xff] %vm258_vm0, %v252_v32  ;;  %v2435_v57 = vld [vmem:[%s2923_s3 + $0x18] sm:$0xf]  ;;  %v2440_v58 = vld [vmem:[%s2923_s3 + $0x1c] sm:$0xf]  ;;  %v2448_v60 = vadd.s32 %v2312_v6, %v304_v50 }
  0x2a   : > { %265 = vst.msk [vmem:[#allocation2 + $0x30] sm:$0xff] %vm258_vm0, %v253_v37  ;;  %277 = vst.msk [vmem:[#allocation3 + $0x30] sm:$0xff] %vm258_vm0, %v253_v37  ;;  %v2445_v59 = vld [vmem:[%s2923_s3 + $0x20] sm:$0xf]  ;;  %v2453_v61 = vld [vmem:[%s2923_s3 + $0x24] sm:$0xf] }
  0x2b   : > { %266 = vst.msk [vmem:[#allocation2 + $0x38] sm:$0xff] %vm258_vm0, %v254_v38  ;;  %278 = vst.msk [vmem:[#allocation3 + $0x38] sm:$0xff] %vm258_vm0, %v254_v38  ;;  %v2458_v62 = vld [vmem:[%s2923_s3 + $0x28] sm:$0xf]  ;;  %v2463_v63 = vld [vmem:[%s2923_s3 + $0x2c] sm:$0xf] }
  0x2c   : > { %267 = vst.msk [vmem:[#allocation2 + $0x40] sm:$0xff] %vm258_vm0, %v255_v39  ;;  %279 = vst.msk [vmem:[#allocation3 + $0x40] sm:$0xff] %vm258_vm0, %v255_v39  ;;  %v2468_v0 = vld [vmem:[%s2923_s3 + $0x30] sm:$0x3]  ;;  %1740 = sbr.rel (%p1784_p9) target bundleno = 1724 (0x6bc), region = 83  ;;  %s2471_s7 = smov (!%p1784_p9), 0  }
  0x2d   : > { %268 = vst.msk [vmem:[#allocation2 + $0x48] sm:$0xff] %vm258_vm0, %v256_v44  ;;  %280 = vst.msk [vmem:[#allocation3 + $0x48] sm:$0xff] %vm258_vm0, %v256_v44 }
  0x2e   : > { %270 = vst.msk [vmem:[#allocation2 + $0x50] sm:$0x1] %vm269_vm1, %v257_v45  ;;  %281 = vst.msk [vmem:[#allocation3 + $0x50] sm:$0x1] %vm269_vm1, %v257_v45 }
  0x33 LB: >> { %vm396_vm2 = vcmask 1043456   ;;  %vm397_vm3 = vcmask 1044480   ;;  %v1792_v5 = vcombine.low %v2305_v3, %v2310_v4  ;;  %v2478_v6 = vld [vmem:[#allocation2] sm:$0xff]  ;;  %v2480_v11 = vld [vmem:[#allocation2 + $0x8] sm:$0xff]  ;;  %v2242_v12 = vmov 65535   ;;  %v2928_v1 = vld [vmem:[#allocation7_spill] sm:$0xff]  ;;  %s2239_s7 = sphi %s2471_s7, %s342_s7  }
  0x34   : >> { %v398_v13 = vsel %vm396_vm2, 4294967295, %v2242_v12  ;;  %v367_v14 = vpack.c.bf16 %v2480_v11, %v2478_v6  ;;  %v1785_v15 = vcombine.low %v2928_v1, %v2300_v2  ;;  %v1834_v16 = vcombine.low %v2317_v7, %v2322_v8  ;;  %v2488_v19 = vld [vmem:[#allocation2 + $0x10] sm:$0xff]  ;;  %v2490_v20 = vld [vmem:[#allocation2 + $0x18] sm:$0xff]  ;;  %v2493_v22 = vld [vmem:[#allocation2 + $0x20] sm:$0xff]  ;;  %s342_s7 = sadd.s32 1, %s2239_s7  }
  0x35   : >> { %v399_v17 = vsel %vm397_vm3, %v398_v13, 0  ;;  %v2495_v24 = vld [vmem:[#allocation2 + $0x28] sm:$0xff]  ;;  %v368_v27 = vpack.c.bf16 %v2490_v20, %v2488_v19  ;;  %v2502_v29 = vld [vmem:[#allocation2 + $0x30] sm:$0xff]  ;;  %v2504_v30 = vld [vmem:[#allocation2 + $0x38] sm:$0xff]  ;;  %vm634_vm4 = vcmask 662528   ;;  %v1864_v40 = vcombine.low %v2327_v9, %v2332_v10  ;;  %p341_p10 = scmp.ge.s32.totalorder %s342_s7, %s2290_s27 }
  0x36   : >> { %v506_v21 = vand.u32 %v1792_v5, %v399_v17  ;;  %1965 = vmatprep.mubr.msk.bf16.mxu1 %vm258_vm0, %v367_v14  ;;  %v401_v25 = vand.u32 %v1785_v15, %v399_v17  ;;  %1951 = vmatprep.mubr.msk.bf16.mxu0 %vm258_vm0, %v367_v14  ;;  %v874_v26 = vand.u32 %v1834_v16, %v399_v17  ;;  %v2507_v31 = vld [vmem:[#allocation2 + $0x40] sm:$0xff]  ;;  %v2509_v32 = vld [vmem:[#allocation2 + $0x48] sm:$0xff]  ;;  %v2521_v37 = vld [vmem:[#allocation2 + $0x50] sm:$0x1]  ;;  %vm653_vm5 = vcmask 1040384  }
  0x37   : >> { %v369_v28 = vpack.c.bf16 %v2495_v24, %v2493_v22  ;;  %v370_v33 = vpack.c.bf16 %v2504_v30, %v2502_v29  ;;  %v371_v34 = vpack.c.bf16 %v2509_v32, %v2507_v31  ;;  %v372_v38 = vpack.c.bf16 %v2521_v37, %v2521_v37  ;;  %v2138_v39 = vld [vmem:[%s2921_s1 + $0x2c] sm:$0xff]  }
  0x38   : >> { %1963 = vmatprep.subr.bf16.mxu1 %v506_v21  ;;  %1949 = vmatprep.subr.bf16.mxu0 %v401_v25  ;;  %v1865_v41 = vcombine.low %v2337_v18, %v2352_v23  ;;  %v1866_v44 = vcombine.low %v2419_v53, %v2424_v54  ;;  %v1867_v45 = vcombine.low %v2435_v57, %v2440_v58  ;;  %vm1189_vm6 = vcmask 1041408  }
  0x39   : >> { %1964 = vmatpush3.bf16.msra.mxu1 %v506_v21  ;;  %1950 = vmatpush3.bf16.msra.mxu0 %v401_v25  ;;  %v1868_v46 = vcombine.low %v2445_v59, %v2453_v61  ;;  %vm1170_vm7 = vcmask 818176  }
  0x3a   : >> { %2025 = vmatprep.subr.bf16.mxu1 %v874_v26 }
  0x3c   : >> { %1966 = vmatmul.mubr.msk.bf16.vlgmr.msra.gmra.mrb[0].mxu1 %vm258_vm0, %v368_v27  ;;  %1952 = vmatmul.mubr.msk.bf16.vlgmr.msra.gmra.mrb[0].mxu0 %vm258_vm0, %v368_v27 }
  0x3d   : >> { %1969 = vmatprep.mubr.msk.bf16.mxu1 %vm258_vm0, %v369_v28  ;;  %2026 = vmatpush3.bf16.msra.mxu1 %v874_v26 }
  0x3e   : >> { %1955 = vmatprep.mubr.msk.bf16.mxu0 %vm258_vm0, %v369_v28  ;;  %2063 = vmatprep.subr.bf16.mxu1 %v1864_v40 }
  0x44   : >> { %1970 = vmatmul.mubr.msk.bf16.gmra.mrb[4].mxu1 %vm258_vm0, %v370_v33  ;;  %1956 = vmatmul.mubr.msk.bf16.gmra.mrb[4].mxu0 %vm258_vm0, %v370_v33 }
  0x45   : >> { %1973 = vmatprep.mubr.msk.bf16.mxu1 %vm258_vm0, %v371_v34  ;;  %1959 = vmatprep.mubr.msk.bf16.mxu0 %vm258_vm0, %v371_v34 }
  0x4c   : >> { %1974 = vmatmul.mubr.msk.bf16.gmra.mrb[8].mxu1 %vm258_vm0, %v372_v38  ;;  %1960 = vmatmul.mubr.msk.bf16.gmra.mrb[8].mxu0 %vm258_vm0, %v372_v38 }
  0x4d   : >> { %2027 = vmatprep.mubr.msk.bf16.mxu1 %vm258_vm0, %v367_v14  ;;  %1989 = vmatprep.mubr.msk.bf16.mxu0 %vm634_vm4, %v2138_v39 }
  0x54   : >> { %2028 = vmatmul.mubr.msk.bf16.vlgmr.msra.gmra.mrb[12].mxu1 %vm258_vm0, %v368_v27 }
  0x55   : >> { %2031 = vmatprep.mubr.msk.bf16.mxu1 %vm258_vm0, %v369_v28  ;;  %2064 = vmatpush3.bf16.msra.mxu1 %v1864_v40 }
  0x56   : >> { %2065 = vmatprep.subr.bf16.mxu1 %v1865_v41 }
  0x59   : >> { %2066 = vmatpush3.bf16.msra.mxu1 %v1865_v41 }
  0x5a   : >> { %2067 = vmatprep.subr.bf16.mxu1 %v1866_v44 }
  0x5c   : >> { %2032 = vmatmul.mubr.msk.bf16.gmra.mrb[16].mxu1 %vm258_vm0, %v370_v33 }
  0x5d   : >> { %2035 = vmatprep.mubr.msk.bf16.mxu1 %vm258_vm0, %v371_v34  ;;  %2068 = vmatpush3.bf16.msra.mxu1 %v1866_v44 }
  0x5e   : >> { %2069 = vmatprep.subr.bf16.mxu1 %v1867_v45 }
  0x61   : >> { %2070 = vmatpush3.bf16.msra.mxu1 %v1867_v45 }
  0x62   : >> { %2071 = vmatprep.subr.bf16.mxu1 %v1868_v46 }
  0x64   : >> { %2036 = vmatmul.mubr.msk.bf16.gmra.mrb[20].mxu1 %vm258_vm0, %v372_v38 }
  0x65   : >> { %2072 = vmatpush3.bf16.msra.mxu1 %v1868_v46 }
 0x10f   : >> { %v1967_v47 = vpop.f32.mrb[0].mxu1  ;;  %v1953_v50 = vpop.f32.mrb[0].mxu0 }
 0x110   : >> { %v542_v5 = vpop.f32.mrb[1].mxu1  ;;  %v437_v12 = vpop.f32.mrb[1].mxu0 }
 0x111   : >> { %v1968_v13 = vpop.f32.mrb[2].mxu1  ;;  %v1954_v14 = vpop.f32.mrb[2].mxu0 }
 0x112   : >> { %v601_v15 = vpack.c.bf16 %v1968_v13, %v1967_v47  ;;  %v545_v16 = vpop.f32.mrb[3].mxu1  ;;  %v495_v17 = vpack.c.bf16 %v1954_v14, %v1953_v50  ;;  %v440_v21 = vpop.f32.mrb[3].mxu0 }
 0x113   : >> { %v600_v25 = vpack.c.bf16 %v545_v16, %v542_v5  ;;  %v494_v26 = vpack.c.bf16 %v440_v21, %v437_v12 }
 0x115   : >> { %1977 = vmatprep.subr.bf16.mxu0 %v600_v25 }
 0x116   : >> { %1978 = vmatpush3.bf16.msra.mxu0 %v600_v25  ;;  %v2243_v25 = vmov 0  }
 0x117   : >> { %v1971_v27 = vpop.f32.mrb[4].mxu1  ;;  %1979 = vmatprep.subr.bf16.mxu0 %v601_v15  ;;  %v1957_v28 = vpop.f32.mrb[4].mxu0  ;;  %v2548_v1 = vsel %vm653_vm5, 65535, %v2243_v25  ;;  %v2142_v25 = vld [vmem:[%s2921_s1 + $0x4c] sm:$0xff]  }
 0x118   : >> { %v558_v33 = vpop.f32.mrb[5].mxu1  ;;  %v453_v34 = vpop.f32.mrb[5].mxu0 }
 0x119   : >> { %v1972_v38 = vpop.f32.mrb[6].mxu1  ;;  %v1958_v39 = vpop.f32.mrb[6].mxu0 }
 0x11a   : >> { %v603_v40 = vpack.c.bf16 %v1972_v38, %v1971_v27  ;;  %v561_v41 = vpop.f32.mrb[7].mxu1  ;;  %1980 = vmatpush3.bf16.msra.mxu0 %v601_v15  ;;  %v497_v44 = vpack.c.bf16 %v1958_v39, %v1957_v28  ;;  %v456_v45 = vpop.f32.mrb[7].mxu0 }
 0x11b   : >> { %v602_v46 = vpack.c.bf16 %v561_v41, %v558_v33  ;;  %v496_v47 = vpack.c.bf16 %v456_v45, %v453_v34  ;;  %v2139_v41 = vld [vmem:[%s2921_s1 + $0x34] sm:$0xff]  }
 0x11d   : >> { %1981 = vmatprep.subr.bf16.mxu0 %v602_v46 }
 0x11e   : >> { %1982 = vmatpush3.bf16.msra.mxu0 %v602_v46 }
 0x11f   : >> { %v1975_v50 = vpop.f32.mrb[8].mxu1  ;;  %1983 = vmatprep.subr.bf16.mxu0 %v603_v40  ;;  %v1961_v5 = vpop.f32.mrb[8].mxu0 }
 0x120   : >> { %v574_v12 = vpop.f32.mrb[9].mxu1  ;;  %v469_v13 = vpop.f32.mrb[9].mxu0  ;;  %v605_v14 = vpack.c.bf16 %v1975_v50, %v1975_v50 }
 0x121   : >> { %v1976_v16 = vpop.f32.mrb[10].mxu1  ;;  %v1962_v21 = vpop.f32.mrb[10].mxu0 }
 0x122   : >> { %v577_v27 = vpop.f32.mrb[11].mxu1  ;;  %1984 = vmatpush3.bf16.msra.mxu0 %v603_v40  ;;  %v472_v15 = vpop.f32.mrb[11].mxu0  ;;  %v657_v34 = vand.u32 %v2548_v1, %v605_v14  ;;  %v2140_v40 = vld [vmem:[%s2921_s1 + $0x3c] sm:$0xff]   ;;  %v2141_v16 = vld [vmem:[%s2921_s1 + $0x44] sm:$0xff]  }
 0x123   : >> { %v604_v28 = vpack.c.bf16 %v577_v27, %v574_v12  ;;  %v498_v33 = vpack.c.bf16 %v472_v15, %v469_v13 }
 0x125   : >> { %1985 = vmatprep.subr.bf16.mxu0 %v604_v28 }
 0x126   : >> { %1986 = vmatpush3.bf16.msra.mxu0 %v604_v28 }
 0x127   : >> { %1987 = vmatprep.subr.bf16.mxu0 %v657_v34  ;;  %v2029_v38 = vpop.f32.mrb[12].mxu1 }
 0x128   : >> { %v910_v39 = vpop.f32.mrb[13].mxu1 }
 0x129   : >> { %v2030_v45 = vpop.f32.mrb[14].mxu1 }
 0x12a   : >> { %1988 = vmatpush3.bf16.msra.mxu0 %v657_v34  ;;  %v969_v46 = vpack.c.bf16 %v2030_v45, %v2029_v38  ;;  %v913_v50 = vpop.f32.mrb[15].mxu1  ;;  %v499_v38 = vpack.c.bf16 %v1961_v5, %v1961_v5  ;;  %v2145_v5 = vld [vmem:[%s2921_s1 + $0x8] sm:$0xff]  }
 0x12b   : >> { %2001 = vmatprep.subr.bf16.mxu0 %v494_v26  ;;  %v968_v12 = vpack.c.bf16 %v913_v50, %v910_v39  ;;  %v2148_v50 = vld [vmem:[%s2921_s1 + $0x20] sm:$0xff]  }
 0x12d   : >> { %1990 = vmatmul.mubr.msk.bf16.vlgmr.msra.gmra.mrb[12].mxu0 %vm634_vm4, %v2139_v41  ;;  %v2144_v41 = vld [vmem:[%s2921_s1] sm:$0xff]  }
 0x12e   : >> { %2002 = vmatpush3.bf16.msra.mxu0 %v494_v26  ;;  %1993 = vmatprep.mubr.msk.bf16.mxu0 %vm634_vm4, %v2140_v40 }
 0x12f   : >> { %2003 = vmatprep.subr.bf16.mxu0 %v495_v17  ;;  %v2033_v13 = vpop.f32.mrb[16].mxu1 }
 0x130   : >> { %v926_v14 = vpop.f32.mrb[17].mxu1 }
 0x131   : >> { %v2034_v21 = vpop.f32.mrb[18].mxu1 }
 0x132   : >> { %2004 = vmatpush3.bf16.msra.mxu0 %v495_v17  ;;  %v971_v27 = vpack.c.bf16 %v2034_v21, %v2033_v13  ;;  %v929_v15 = vpop.f32.mrb[19].mxu1  ;;  %v2143_v17 = vld [vmem:[%s2921_s1 + $0x54] ss:$0 sps:$4 sm:$0x11]   ;;  %v2152_v21 = vld [vmem:[%s2921_s1 + $0x68] sm:$0xff]  }
 0x133   : >> { %2005 = vmatprep.subr.bf16.mxu0 %v496_v47  ;;  %v970_v28 = vpack.c.bf16 %v929_v15, %v926_v14  ;;  %v2149_v13 = vld [vmem:[%s2921_s1 + $0x28] ss:$0 sps:$4 sm:$0x11]   ;;  %v1869_v15 = vcombine.low %v2458_v62, %v2463_v63 }
 0x135   : >> { %1994 = vmatmul.mubr.msk.bf16.gmra.mrb[16].mxu0 %vm634_vm4, %v2141_v16  ;;  %v2151_v16 = vld [vmem:[%s2921_s1 + $0x60] sm:$0xff]   ;;  %2073 = vmatprep.subr.bf16.mxu1 %v1869_v15 }
 0x136   : >> { %2006 = vmatpush3.bf16.msra.mxu0 %v496_v47  ;;  %1997 = vmatprep.mubr.msk.bf16.mxu0 %vm634_vm4, %v2142_v25  ;;  %v786_v47 = vand.u32 %v2548_v1, %v499_v38  ;;  %v2154_v25 = vld [vmem:[%s2921_s1 + $0x78] sm:$0xff]  }
 0x137   : >> { %2007 = vmatprep.subr.bf16.mxu0 %v497_v44  ;;  %v2037_v26 = vpop.f32.mrb[20].mxu1  ;;  %2074 = vmatpush3.bf16.msra.mxu1 %v1869_v15 }
 0x138   : >> { %v942_v34 = vpop.f32.mrb[21].mxu1 }
 0x139   : >> { %v2038_v39 = vpop.f32.mrb[22].mxu1 }
 0x13a   : >> { %2008 = vmatpush3.bf16.msra.mxu0 %v497_v44  ;;  %v945_v45 = vpop.f32.mrb[23].mxu1  ;;  %v2146_v44 = vld [vmem:[%s2921_s1 + $0x10] sm:$0xff]  }
 0x13b   : >> { %2009 = vmatprep.subr.bf16.mxu0 %v498_v33  ;;  %v972_v40 = vpack.c.bf16 %v945_v45, %v942_v34 }
 0x13d   : >> { %1998 = vmatmul.mubr.msk.bf16.gmra.mrb[20].mxu0 %vm634_vm4, %v2143_v17 }
 0x13e   : >> { %2010 = vmatpush3.bf16.msra.mxu0 %v498_v33  ;;  %2013 = vmatprep.mubr.msk.bf16.mxu0 %vm634_vm4, %v2144_v41  ;;  %v2147_v33 = vld [vmem:[%s2921_s1 + $0x18] sm:$0xff]  }
 0x13f   : >> { %2011 = vmatprep.subr.bf16.mxu0 %v786_v47 }
 0x142   : >> { %2012 = vmatpush3.bf16.msra.mxu0 %v786_v47 }
 0x143   : >> { %2039 = vmatprep.subr.bf16.mxu0 %v968_v12 }
 0x145   : >> { %2014 = vmatmul.mubr.msk.bf16.vlgmr.msra.gmra.mrb[12].mxu0 %vm634_vm4, %v2145_v5 }
 0x146   : >> { %2040 = vmatpush3.bf16.msra.mxu0 %v968_v12  ;;  %2017 = vmatprep.mubr.msk.bf16.mxu0 %vm634_vm4, %v2146_v44  ;;  %v973_v12 = vpack.c.bf16 %v2037_v26, %v2037_v26 }
 0x147   : >> { %2041 = vmatprep.subr.bf16.mxu0 %v969_v46 }
 0x148   : >> { %v1021_v14 = vand.u32 %v973_v12, %v2548_v1  ;;  %v2153_v1 = vld [vmem:[%s2921_s1 + $0x70] sm:$0xff]  }
 0x14a   : >> { %2042 = vmatpush3.bf16.msra.mxu0 %v969_v46  ;;  %v2150_v46 = vld [vmem:[%s2921_s1 + $0x58] sm:$0xff]  }
 0x14b   : >> { %2043 = vmatprep.subr.bf16.mxu0 %v970_v28 }
 0x14d   : >> { %2018 = vmatmul.mubr.msk.bf16.gmra.mrb[16].mxu0 %vm634_vm4, %v2147_v33 }
 0x14e   : >> { %2044 = vmatpush3.bf16.msra.mxu0 %v970_v28  ;;  %2021 = vmatprep.mubr.msk.bf16.mxu0 %vm634_vm4, %v2148_v50  ;;  %v1870_v28 = vcombine.low %v2468_v0, %v2468_v0 }
 0x14f   : >> { %2045 = vmatprep.subr.bf16.mxu0 %v971_v27 }
 0x150   : >> { %2113 = vmatprep.subr.msk.bf16.mxu1 %vm1189_vm6, %v1870_v28  ;;  %v1191_v26 = vsel %vm1189_vm6, %v1870_v28, 0 }
 0x151   : >> { %2076 = vmatpush3.bf16.msra.mxu1 %v1191_v26 }
 0x152   : >> { %2046 = vmatpush3.bf16.msra.mxu0 %v971_v27  ;;  %v2155_v27 = vld [vmem:[%s2921_s1 + $0x80] ss:$0 sps:$4 sm:$0x11]  }
 0x153   : >> { %2047 = vmatprep.subr.bf16.mxu0 %v972_v40 }
 0x155   : >> { %2022 = vmatmul.mubr.msk.bf16.gmra.mrb[20].mxu0 %vm634_vm4, %v2149_v13 }
 0x156   : >> { %2048 = vmatpush3.bf16.msra.mxu0 %v972_v40  ;;  %2051 = vmatprep.mubr.msk.bf16.mxu0 %vm634_vm4, %v2150_v46 }
 0x157   : >> { %2049 = vmatprep.subr.bf16.mxu0 %v1021_v14 }
 0x15a   : >> { %2050 = vmatpush3.bf16.msra.mxu0 %v1021_v14 }
 0x15d   : >> { %2052 = vmatmul.mubr.msk.bf16.vlgmr.msra.gmra.mrb[12].mxu0 %vm634_vm4, %v2151_v16 }
 0x15e   : >> { %2055 = vmatprep.mubr.msk.bf16.mxu0 %vm634_vm4, %v2152_v21 }
 0x165   : >> { %2056 = vmatmul.mubr.msk.bf16.gmra.mrb[16].mxu0 %vm634_vm4, %v2153_v1 }
 0x166   : >> { %2059 = vmatprep.mubr.msk.bf16.mxu0 %vm634_vm4, %v2154_v25 }
 0x16d   : >> { %2060 = vmatmul.mubr.msk.bf16.gmra.mrb[20].mxu0 %vm634_vm4, %v2155_v27 }
 0x230   : >> { %v2053_v34 = vpop.f32.mrb[12].mxu0 }
 0x231   : >> { %v1057_v38 = vpop.f32.mrb[13].mxu0  ;;  %v1116_v39 = vmax.f32 %v2053_v34, 0.0 }
 0x232   : >> { %v2054_v17 = vpop.f32.mrb[14].mxu0  ;;  %v1114_v40 = vmax.f32 %v1057_v38, 0.0 }
 0x233   : >> { %v1117_v41 = vmax.f32 %v2054_v17, 0.0  ;;  %v1060_v45 = vpop.f32.mrb[15].mxu0 }
 0x234   : >> { %v1115_v47 = vmax.f32 %v1060_v45, 0.0 }
 0x235   : >> { %v1126_v5 = vpack.c.bf16 %v1117_v41, %v1116_v39 }
 0x236   : >> { %v1125_v44 = vpack.c.bf16 %v1115_v47, %v1114_v40 }
 0x238   : >> { %v2057_v33 = vpop.f32.mrb[16].mxu0  ;;  %2077 = vmatprep.mubr.msk.bf16.mxu1 %vm1170_vm7, %v1125_v44 }
 0x239   : >> { %v1073_v50 = vpop.f32.mrb[17].mxu0  ;;  %2078 = vmatmul.mubr.msk.bf16.vlgmr.msra.gmra.mrb[24].mxu1 %vm1170_vm7, %v1126_v5  ;;  %v1120_v13 = vmax.f32 %v2057_v33, 0.0 }
 0x23a   : >> { %v2058_v12 = vpop.f32.mrb[18].mxu0  ;;  %v1118_v16 = vmax.f32 %v1073_v50, 0.0 }
 0x23b   : >> { %v1121_v46 = vmax.f32 %v2058_v12, 0.0  ;;  %v1076_v14 = vpop.f32.mrb[19].mxu0 }
 0x23c   : >> { %v1119_v21 = vmax.f32 %v1076_v14, 0.0 }
 0x23d   : >> { %v1128_v1 = vpack.c.bf16 %v1121_v46, %v1120_v13 }
 0x23e   : >> { %v1127_v25 = vpack.c.bf16 %v1119_v21, %v1118_v16 }
 0x240   : >> { %v2061_v27 = vpop.f32.mrb[20].mxu0  ;;  %2081 = vmatprep.mubr.msk.bf16.mxu1 %vm1170_vm7, %v1127_v25 }
 0x241   : >> { %v1089_v15 = vpop.f32.mrb[21].mxu0  ;;  %2082 = vmatmul.mubr.msk.bf16.gmra.mrb[28].mxu1 %vm1170_vm7, %v1128_v1  ;;  %v1124_v26 = vmax.f32 %v2061_v27, 0.0 }
 0x242   : >> { %v2062_v28 = vpop.f32.mrb[22].mxu0  ;;  %v1122_v38 = vmax.f32 %v1089_v15, 0.0 }
 0x243   : >> { %v1092_v34 = vpop.f32.mrb[23].mxu0  ;;  %v1130_v41 = vpack.c.bf16 %v1124_v26, %v1124_v26 }
 0x244   : >> { %v1123_v17 = vmax.f32 %v1092_v34, 0.0 }
 0x246   : >> { %v1129_v39 = vpack.c.bf16 %v1123_v17, %v1122_v38 }
 0x248   : >> { %2085 = vmatprep.mubr.msk.bf16.mxu1 %vm1170_vm7, %v1129_v39 }
 0x249   : >> { %2086 = vmatmul.mubr.msk.bf16.gmra.mrb[32].mxu1 %vm1170_vm7, %v1130_v41  ;;  %v1397_v41 = vsel %vm258_vm0, %v2480_v11, 0.0 }
 0x30c   : >> { %v2079_v45 = vpop.f32.mrb[24].mxu1 }
 0x30d   : >> { %v1227_v40 = vpop.f32.mrb[25].mxu1  ;;  %v1279_v47 = vsel %vm258_vm0, %v2079_v45, -inf }
 0x30e   : >> { %1280 = vmax.xlane.f32.xlu1 %v1279_v47  ;;  %v2080_v5 = vpop.f32.mrb[26].mxu1  ;;  %v1273_v44 = vsel %vm258_vm0, %v1227_v40, -inf  ;;  %v1406_v47 = vsel %vm258_vm0, %v2493_v22, 0.0 }
 0x30f   : >> { %1274 = vmax.xlane.f32.xlu0 %v1273_v44  ;;  %v1230_v33 = vpop.f32.mrb[27].mxu1  ;;  %v1282_v50 = vsel %vm258_vm0, %v2080_v5, -inf  ;;  %v1394_v44 = vsel %vm258_vm0, %v2478_v6, 0.0 }
 0x310   : >> { %v1276_v16 = vsel %vm258_vm0, %v1230_v33, -inf }
 0x313   : >> { %1283 = vmax.xlane.f32.xlu0 %v1282_v50  ;;  %v1400_v50 = vsel %vm258_vm0, %v2488_v19, 0.0 }
 0x314   : >> { %v2083_v12 = vpop.f32.mrb[28].mxu1 }
 0x315   : >> { %v1243_v13 = vpop.f32.mrb[29].mxu1  ;;  %v1291_v46 = vsel %vm258_vm0, %v2083_v12, -inf }
 0x316   : >> { %1292 = vmax.xlane.f32.xlu1 %v1291_v46  ;;  %v2635_v14 = vpop.f32.mrb[30].mxu1  ;;  %v1285_v1 = vsel %vm258_vm0, %v1243_v13, -inf  ;;  %v1409_v46 = vsel %vm258_vm0, %v2495_v24, 0.0 }
 0x317   : >> { %1277 = vmax.xlane.f32.xlu0 %v1276_v16  ;;  %v1246_v21 = vpop.f32.mrb[31].mxu1  ;;  %v1294_v28 = vsel %vm258_vm0, %v2635_v14, -inf }
 0x318   : >> { %v1288_v25 = vsel %vm258_vm0, %v1246_v21, -inf }
 0x31a   : >> { %1286 = vmax.xlane.f32.xlu1 %v1285_v1 }
 0x31b   : >> { %1289 = vmax.xlane.f32.xlu0 %v1288_v25 }
 0x31c   : >> { %v2640_v27 = vpop.f32.mrb[32].mxu1 }
 0x31d   : >> { %v2642_v15 = vpop.f32.mrb[33].mxu1  ;;  %v1303_v39 = vsel %vm269_vm1, %v2640_v27, -inf }
 0x31e   : >> { %1295 = vmax.xlane.f32.xlu1 %v1294_v28  ;;  %v2088_v26 = vpop.f32.mrb[34].mxu1  ;;  %v1297_v34 = vsel %vm258_vm0, %v2642_v15, -inf }
 0x31f   : >> { %1298 = vmax.xlane.f32.xlu0 %v1297_v34  ;;  %v1262_v38 = vpop.f32.mrb[35].mxu1 }
 0x320   : >> { %v1300_v17 = vsel %vm258_vm0, %v1262_v38, -inf }
 0x322   : >> { %1301 = vmax.xlane.f32.xlu1 %v1300_v17 }
 0x323   : >> { %1304 = vmax.xlane.f32.xlu0 %v1303_v39 }
 0x326   : >> { %1398 = vadd.xlane.f32.xlu1 %v1397_v41 }
 0x327   : >> { %1395 = vadd.xlane.f32.xlu0 %v1394_v44 }
 0x32a   : >> { %1407 = vadd.xlane.f32.xlu1 %v1406_v47 }
 0x32b   : >> { %1401 = vadd.xlane.f32.xlu0 %v1400_v50 }
 0x32f   : >> { %1410 = vadd.xlane.f32.xlu0 %v1409_v46 }
 0x39b   : >> { %v1281_v16 = vpop.xlane.xlu1 %1280 }
 0x39c   : >> { %v1308_v1 = vsub.f32 %v2079_v45, %v1281_v16  ;;  %v1275_v11 = vpop.xlane.xlu0 %1274 }
 0x39d   : >> { %v1306_v25 = vsub.f32 %v1227_v40, %v1275_v11 }
 0x39e   : >> { %v1321_v28 = vmul.f32 1.442695, %v1308_v1 }
 0x39f   : >> { %v1317_v26 = vmul.f32 1.442695, %v1306_v25 }
 0x3a0   : >> { %2156 = vpow2.f32 %v1321_v28  ;;  %v1284_v22 = vpop.xlane.xlu0 %1283 }
 0x3a1   : >> { %v1309_v34 = vsub.f32 %v2080_v5, %v1284_v22  ;;  %2158 = vpow2.f32 %v1317_v26 }
 0x3a3   : >> { %v1323_v6 = vmul.f32 1.442695, %v1309_v34  ;;  %v1293_v17 = vpop.xlane.xlu1 %1292 }
 0x3a4   : >> { %v1312_v39 = vsub.f32 %v2083_v12, %v1293_v17  ;;  %v1278_v41 = vpop.xlane.xlu0 %1277 }
 0x3a5   : >> { %v1307_v19 = vsub.f32 %v1230_v33, %v1278_v41  ;;  %2160 = vpow2.f32 %v1323_v6 }
 0x3a6   : >> { %v1329_v47 = vmul.f32 1.442695, %v1312_v39 }
 0x3a7   : >> { %v1319_v44 = vmul.f32 1.442695, %v1307_v19  ;;  %v1287_v24 = vpop.xlane.xlu1 %1286 }
 0x3a8   : >> { %v1310_v50 = vsub.f32 %v1243_v13, %v1287_v24  ;;  %v1290_v46 = vpop.xlane.xlu0 %1289 }
 0x3a9   : >> { %2162 = vpow2.f32 %v1319_v44  ;;  %v1311_v45 = vsub.f32 %v1246_v21, %v1290_v46 }
 0x3aa   : >> { %v2661_v40 = vpop.eup %2156  ;;  %2164 = vpow2.f32 %v1329_v47  ;;  %v1325_v16 = vmul.f32 1.442695, %v1310_v50 }
 0x3ab   : >> { %v1327_v1 = vmul.f32 1.442695, %v1311_v45  ;;  %v1296_v5 = vpop.xlane.xlu1 %1295  ;;  %v1345_v11 = vsel %vm258_vm0, %v2661_v40, 0.0  ;;  %v2665_v12 = vpop.eup %2158 }
 0x3ac   : >> { %v1313_v33 = vsub.f32 %v2635_v14, %v1296_v5  ;;  %v1299_v25 = vpop.xlane.xlu0 %1298  ;;  %1346 = vadd.xlane.f32.xlu1 %v1345_v11  ;;  %v1339_v26 = vsel %vm258_vm0, %v2665_v12, 0.0 }
 0x3ad   : >> { %2166 = vpow2.f32 %v1327_v1  ;;  %v1314_v13 = vsub.f32 %v2642_v15, %v1299_v25 }
 0x3ae   : >> { %2168 = vpow2.f32 %v1325_v16  ;;  %v1331_v21 = vmul.f32 1.442695, %v1313_v33 }
 0x3af   : >> { %v1302_v28 = vpop.xlane.xlu1 %1301  ;;  %v2671_v22 = vpop.eup %2160  ;;  %v1333_v39 = vmul.f32 1.442695, %v1314_v13 }
 0x3b0   : >> { %v1315_v34 = vsub.f32 %v1262_v38, %v1302_v28  ;;  %v1305_v6 = vpop.xlane.xlu0 %1304  ;;  %1340 = vadd.xlane.f32.xlu1 %v1339_v26  ;;  %2170 = vpow2.f32 %v1331_v21  ;;  %v1348_v15 = vsel %vm258_vm0, %v2671_v22, 0.0  ;;  %v1412_v21 = vsel %vm258_vm0, %v2502_v29, 0.0 }
 0x3b1   : >> { %v1316_v17 = vsub.f32 %v2640_v27, %v1305_v6  ;;  %v1403_v28 = vsel %vm258_vm0, %v2490_v20, 0.0  ;;  %v1415_v26 = vsel %vm258_vm0, %v2504_v30, 0.0  ;;  %v1421_v6 = vsel %vm258_vm0, %v2509_v32, 0.0 }
 0x3b2   : >> { %v1335_v41 = vmul.f32 1.442695, %v1315_v34  ;;  %v1418_v34 = vsel %vm258_vm0, %v2507_v31, 0.0 }
 0x3b3   : >> { %v2674_v14 = vpop.eup %2162  ;;  %v1337_v19 = vmul.f32 1.442695, %v1316_v17  ;;  %v1424_v17 = vsel %vm269_vm1, %v2521_v37, 0.0  ;;  %v2720_v29 = vpop.xlane.xlu1 %1398  ;;  %v358_v37 = vld [vmem:[#allocation3 + $0x10] sm:$0xff] }
 0x3b4   : >> { %1349 = vadd.xlane.f32.xlu1 %v1348_v15  ;;  %v1342_v47 = vsel %vm258_vm0, %v2674_v14, 0.0  ;;  %v2680_v44 = vpop.eup %2164  ;;  %v2722_v20 = vpop.xlane.xlu0 %1395  ;;  %vm1428_vm10 = vcmp.eq.f32.partialorder %v2720_v29, 0.0 }
 0x3b5   : >> { %2172 = vpow2.f32 %v1337_v19  ;;  %1343 = vadd.xlane.f32.xlu0 %v1342_v47  ;;  %v1357_v27 = vsel %vm258_vm0, %v2680_v44, 0.0  ;;  %vm1427_vm9 = vcmp.eq.f32.partialorder %v2722_v20, 0.0 }
 0x3b6   : >> { %2174 = vpow2.f32 %v1333_v39 }
 0x3b7   : >> { %v2682_v38 = vpop.eup %2166  ;;  %2176 = vpow2.f32 %v1335_v41  ;;  %v2724_v39 = vpop.xlane.xlu1 %1407 }
 0x3b8   : >> { %v1354_v24 = vsel %vm258_vm0, %v2682_v38, 0.0  ;;  %v2688_v50 = vpop.eup %2168  ;;  %v2726_v30 = vpop.xlane.xlu0 %1401  ;;  %vm1431_vm12 = vcmp.eq.f32.partialorder %v2724_v39, 0.0 }
 0x3b9   : >> { %1358 = vadd.xlane.f32.xlu0 %v1357_v27  ;;  %1355 = vadd.xlane.f32.xlu1 %v1354_v24  ;;  %v1351_v46 = vsel %vm258_vm0, %v2688_v50, 0.0  ;;  %vm1429_vm8 = vcmp.eq.f32.partialorder %v2726_v30, 0.0 }
 0x3ba   : >> { %v2692_v45 = vpop.eup %2170 }
 0x3bb   : >> { %v1360_v5 = vsel %vm258_vm0, %v2692_v45, 0.0 }
 0x3bc   : >> { %v1411_v31 = vpop.xlane.xlu0 %1410 }
 0x3bd   : >> { %1352 = vadd.xlane.f32.xlu0 %v1351_v46  ;;  %vm1432_vm11 = vcmp.eq.f32.partialorder %v1411_v31, 0.0 }
 0x3bf   : >> { %v2694_v16 = vpop.eup %2172 }
 0x3c0   : >> { %v2696_v1 = vpop.eup %2174  ;;  %v1369_v11 = vsel %vm269_vm1, %v2694_v16, 0.0 }
 0x3c1   : >> { %v2702_v33 = vpop.eup %2176  ;;  %1361 = vadd.xlane.f32.xlu0 %v1360_v5  ;;  %1370 = vadd.xlane.f32.xlu1 %v1369_v11  ;;  %v1363_v25 = vsel %vm258_vm0, %v2696_v1, 0.0 }
 0x3c2   : >> { %v1366_v13 = vsel %vm258_vm0, %v2702_v33, 0.0 }
 0x3c5   : >> { %1364 = vadd.xlane.f32.xlu1 %v1363_v25  ;;  %1367 = vadd.xlane.f32.xlu0 %v1366_v13  ;;  %v356_v25 = vld [vmem:[#allocation3] sm:$0xff] }
 0x3c9   : >> { %1413 = vadd.xlane.f32.xlu1 %v1412_v21  ;;  %1404 = vadd.xlane.f32.xlu0 %v1403_v28 }
 0x3cd   : >> { %1416 = vadd.xlane.f32.xlu1 %v1415_v26  ;;  %1419 = vadd.xlane.f32.xlu0 %v1418_v34  ;;  %v357_v26 = vld [vmem:[#allocation3 + $0x8] sm:$0xff] }
 0x3d1   : >> { %1422 = vadd.xlane.f32.xlu1 %v1421_v6  ;;  %1425 = vadd.xlane.f32.xlu0 %v1424_v17 }
 0x439   : >> { %v1347_v41 = vpop.xlane.xlu1 %1346 }
 0x43a   : >> { %2178 = vrcp.f32 %v1347_v41 }
 0x43d   : >> { %v1341_v19 = vpop.xlane.xlu1 %1340 }
 0x43e   : >> { %2180 = vrcp.f32 %v1341_v19 }
 0x441   : >> { %v1350_v15 = vpop.xlane.xlu1 %1349 }
 0x442   : >> { %v1344_v32 = vpop.xlane.xlu0 %1343 }
 0x443   : >> { %2182 = vrcp.f32 %v1344_v32 }
 0x444   : >> { %v2179_v47 = vpop.eup %2178  ;;  %2184 = vrcp.f32 %v1350_v15 }
 0x445   : >> { %v1377_v27 = vmul.f32 %v2179_v47, %v2661_v40  ;;  %v361_v47 = vld [vmem:[#allocation3 + $0x28] sm:$0xff] }
 0x446   : >> { %v1359_v24 = vpop.xlane.xlu0 %1358  ;;  %v1356_v46 = vpop.xlane.xlu1 %1355 }
 0x447   : >> { %v1462_v5 = vsel %vm1429_vm8, %v1377_v27, %v358_v37  ;;  %2186 = vrcp.f32 %v1356_v46  ;;  %v359_v46 = vld [vmem:[#allocation3 + $0x18] sm:$0xff] }
 0x448   : >> { %v2181_v11 = vpop.eup %2180  ;;  %1473 = vst.msk [vmem:[#allocation3 + $0x10] sm:$0xff] %vm258_vm0, %v1462_v5  ;;  %2188 = vrcp.f32 %v1359_v24  ;;  %v362_v5 = vld [vmem:[#allocation3 + $0x30] sm:$0xff] }
 0x449   : >> { %v1373_v13 = vmul.f32 %v2181_v11, %v2665_v12 }
 0x44a   : >> { %v1353_v21 = vpop.xlane.xlu0 %1352 }
 0x44b   : >> { %2190 = vrcp.f32 %v1353_v21  ;;  %v1460_v40 = vsel %vm1427_vm9, %v1373_v13, %v356_v25  ;;  %v2763_v39 = vsel %vm1427_vm9, %v1373_v13, 0.0 }
 0x44c   : >> { %1471 = vst.msk [vmem:[#allocation3] sm:$0xff] %vm258_vm0, %v1460_v40 }
 0x44d   : >> { %v2183_v28 = vpop.eup %2182 }
 0x44e   : >> { %v1362_v34 = vpop.xlane.xlu0 %1361  ;;  %v1371_v6 = vpop.xlane.xlu1 %1370  ;;  %v1375_v17 = vmul.f32 %v2183_v28, %v2674_v14 }
 0x44f   : >> { %2192 = vrcp.f32 %v1362_v34  ;;  %v2185_v41 = vpop.eup %2184 }
 0x450   : >> { %v1461_v12 = vsel %vm1428_vm10, %v1375_v17, %v357_v26  ;;  %2194 = vrcp.f32 %v1371_v6  ;;  %v1379_v21 = vmul.f32 %v2185_v41, %v2671_v22  ;;  %v360_v26 = vld [vmem:[#allocation3 + $0x20] sm:$0xff]  ;;  %v2755_v6 = vsel %vm1429_vm8, %v1377_v27, 0.0 }
 0x451   : >> { %1472 = vst.msk [vmem:[#allocation3 + $0x8] sm:$0xff] %vm258_vm0, %v1461_v12  ;;  %v2187_v19 = vpop.eup %2186  ;;  %v2769_v30 = vsel %vm1428_vm10, %v1375_v17, 0.0  ;;  %v1495_v17 = vsel %vm258_vm0, %v2755_v6, -inf }
 0x452   : >> { %v1368_v15 = vpop.xlane.xlu0 %1367  ;;  %v1365_v32 = vpop.xlane.xlu1 %1364  ;;  %v1383_v24 = vmul.f32 %v2187_v19, %v2682_v38  ;;  %v363_v19 = vld [vmem:[#allocation3 + $0x38] sm:$0xff] }
 0x453   : >> { %v2189_v37 = vpop.eup %2188  ;;  %2196 = vrcp.f32 %v1368_v15 }
 0x454   : >> { %2198 = vrcp.f32 %v1365_v32  ;;  %v1465_v11 = vsel %vm1432_vm11, %v1383_v24, %v361_v47  ;;  %v1385_v40 = vmul.f32 %v2189_v37, %v2680_v44  ;;  %v2751_v38 = vsel %vm1432_vm11, %v1383_v24, 0.0 }
 0x455   : >> { %v2191_v14 = vpop.eup %2190  ;;  %1476 = vst.msk [vmem:[#allocation3 + $0x28] sm:$0xff] %vm258_vm0, %v1465_v11  ;;  %v1499_v13 = vsel %vm258_vm0, %v2751_v38, -inf }
 0x456   : >> { %v1405_v25 = vpop.xlane.xlu0 %1404  ;;  %v1414_v28 = vpop.xlane.xlu1 %1413  ;;  %v1381_v34 = vmul.f32 %v2191_v14, %v2688_v50 }
 0x457   : >> { %vm1430_vm13 = vcmp.eq.f32.partialorder %v1405_v25, 0.0  ;;  %vm1433_vm14 = vcmp.eq.f32.partialorder %v1414_v28, 0.0  ;;  %v1493_v25 = vsel %vm258_vm0, %v2763_v39, -inf }
 0x458   : >> { %v1463_v22 = vsel %vm1430_vm13, %v1379_v21, %v359_v46  ;;  %v1466_v12 = vsel %vm1433_vm14, %v1385_v40, %v362_v5  ;;  %v2757_v44 = vsel %vm1433_vm14, %v1385_v40, 0.0  ;;  %v1464_v50 = vsel %vm1431_vm12, %v1381_v34, %v360_v26  ;;  %v365_v40 = vld [vmem:[#allocation3 + $0x48] sm:$0xff] }
 0x459   : >> { %v2193_v41 = vpop.eup %2192  ;;  %1474 = vst.msk [vmem:[#allocation3 + $0x18] sm:$0xff] %vm258_vm0, %v1463_v22  ;;  %1477 = vst.msk [vmem:[#allocation3 + $0x30] sm:$0xff] %vm258_vm0, %v1466_v12  ;;  %v2765_v31 = vsel %vm1431_vm12, %v1381_v34, 0.0  ;;  %v2771_v27 = vsel %vm1430_vm13, %v1379_v21, 0.0  ;;  %v1501_v15 = vsel %vm258_vm0, %v2757_v44, -inf  ;;  %v1494_v46 = vsel %vm258_vm0, %v2769_v30, -inf }
 0x45a   : >> { %v1420_v32 = vpop.xlane.xlu0 %1419  ;;  %1475 = vst.msk [vmem:[#allocation3 + $0x20] sm:$0xff] %vm258_vm0, %v1464_v50  ;;  %v1387_v47 = vmul.f32 %v2193_v41, %v2692_v45  ;;  %v1417_v20 = vpop.xlane.xlu1 %1416  ;;  %v1497_v29 = vsel %vm258_vm0, %v2765_v31, -inf  ;;  %v1496_v45 = vsel %vm258_vm0, %v2771_v27, -inf  ;;  %v1502_v11 = vmax.f32 %v1495_v17, %v1501_v15  ;;  %v366_v21 = vld [vmem:[#allocation3 + $0x50] sm:$0x1]  ;;  %v364_v34 = vld [vmem:[#allocation3 + $0x40] sm:$0xff] }
 0x45b   : >> { %v2195_v37 = vpop.eup %2194  ;;  %vm1434_vm15 = vcmp.eq.f32.partialorder %v1417_v20, 0.0  ;;  %v1500_v28 = vmax.f32 %v1494_v46, %v1499_v13  ;;  %vm1435_vm2 = vcmp.eq.f32.partialorder %v1420_v32, 0.0  ;;  %v1498_v22 = vmax.f32 %v1493_v25, %v1497_v29 }
 0x45c   : >> { %v1467_v24 = vsel %vm1434_vm15, %v1387_v47, %v363_v19  ;;  %v2783_v14 = vsel %vm1434_vm15, %v1387_v47, 0.0  ;;  %v1393_v41 = vmul.f32 %v2195_v37, %v2694_v16 }
 0x45d   : >> { %v2197_v5 = vpop.eup %2196  ;;  %1478 = vst.msk [vmem:[#allocation3 + $0x38] sm:$0xff] %vm258_vm0, %v1467_v24  ;;  %v1503_v47 = vsel %vm258_vm0, %v2783_v14, -inf }
 0x45e   : >> { %v2199_v26 = vpop.eup %2198  ;;  %v1426_v12 = vpop.xlane.xlu0 %1425  ;;  %v1391_v50 = vmul.f32 %v2197_v5, %v2702_v33  ;;  %v1504_v37 = vmax.f32 %v1496_v45, %v1503_v47 }
 0x45f   : >> { %v1423_v19 = vpop.xlane.xlu1 %1422  ;;  %v1389_v15 = vmul.f32 %v2199_v26, %v2696_v1  ;;  %vm1437_vm3 = vcmp.eq.f32.partialorder %v1426_v12, 0.0 }
 0x460   : >> { %vm1436_vm4 = vcmp.eq.f32.partialorder %v1423_v19, 0.0  ;;  %v1470_v20 = vsel %vm1437_vm3, %v1393_v41, %v366_v21  ;;  %v1492_v17 = vsel %vm1437_vm3, %v1393_v41, 0.0 }
 0x461   : >> { %v1469_v13 = vsel %vm1436_vm4, %v1391_v50, %v365_v40  ;;  %v1491_v24 = vsel %vm1436_vm4, %v1391_v50, 0.0  ;;  %v1468_v46 = vsel %vm1435_vm2, %v1389_v15, %v364_v34  ;;  %v1490_v32 = vsel %vm1435_vm2, %v1389_v15, 0.0  ;;  %1481 = vst.msk [vmem:[#allocation3 + $0x50] sm:$0x1] %vm269_vm1, %v1470_v20 }
 0x462   : >> { %v1509_v16 = vsel %vm269_vm1, %v1492_v17, -inf  ;;  %1480 = vst.msk [vmem:[#allocation3 + $0x48] sm:$0xff] %vm258_vm0, %v1469_v13  ;;  %v1507_v33 = vsel %vm258_vm0, %v1491_v24, -inf  ;;  %1479 = vst.msk [vmem:[#allocation3 + $0x40] sm:$0xff] %vm258_vm0, %v1468_v46  ;;  %v1505_v1 = vsel %vm258_vm0, %v1490_v32, -inf }
 0x463   : >> { %v1510_v29 = vmax.f32 %v1502_v11, %v1509_v16  ;;  %v1508_v5 = vmax.f32 %v1500_v28, %v1507_v33  ;;  %v1506_v25 = vmax.f32 %v1498_v22, %v1505_v1 }
 0x465   : >> { %v1512_v21 = vmax.f32 %v1510_v29, %v1504_v37  ;;  %v1511_v40 = vmax.f32 %v1506_v25, %v1508_v5 }
 0x467   : >> { %v1513_v26 = vmax.f32 %v1511_v40, %v1512_v21 }
 0x469   : >> { %1514 = vmax.xlane.f32.xlu1 %v1513_v26 }
 0x4f6   : >> { %v1515_v34 = vpop.xlane.xlu1 %1514 }
 0x4f7   : >> { %v1516_v12 = vrot.slane %v1515_v34, 4 }
 0x4f9   : >> { %v1517_v41 = vmax.f32 %v1515_v34, %v1516_v12 }
 0x4fb   : >> { %v1518_v50 = vrot.slane %v1517_v41, 2 }
 0x4fd   : >> { %v1519_v19 = vmax.f32 %v1517_v41, %v1518_v50 }
 0x4ff   : >> { %v1520_v15 = vrot.slane %v1519_v19, 1 }
 0x501   : >> { %v1521_v20 = vmax.f32 %v1519_v19, %v1520_v15 }
 0x503   : >> { %2115 = vpush %v1521_v20 }
 0x534   : >> { %s2116_s25 = spop %2115 }
 0x535   : >> { %v1523_v13 = vstv %s2116_s25 }
 0x536   : >> { %vm1524_vm5 = vcmp.eq.f32.partialorder %v2763_v39, %v1523_v13  ;;  %vm1525_vm6 = vcmp.eq.f32.partialorder %v2769_v30, %v1523_v13  ;;  %vm1526_vm7 = vcmp.eq.f32.partialorder %v2755_v6, %v1523_v13  ;;  %vm1527_vm8 = vcmp.eq.f32.partialorder %v2771_v27, %v1523_v13 }
 0x537   : >> { %vm1528_vm9 = vcmp.eq.f32.partialorder %v2765_v31, %v1523_v13  ;;  %vm1529_vm10 = vcmp.eq.f32.partialorder %v2751_v38, %v1523_v13  ;;  %vm1530_vm11 = vcmp.eq.f32.partialorder %v2757_v44, %v1523_v13  ;;  %vm1531_vm12 = vcmp.eq.f32.partialorder %v2783_v14, %v1523_v13 }
 0x538   : >> { %vm1532_vm13 = vcmp.eq.f32.partialorder %v1490_v32, %v1523_v13  ;;  %vm1533_vm14 = vcmp.eq.f32.partialorder %v1491_v24, %v1523_v13  ;;  %vm1534_vm15 = vcmp.eq.f32.partialorder %v1492_v17, %v1523_v13  ;;  %v1535_v45 = vsel %vm1524_vm5, %v2372_v35, 729 }
 0x539   : >> { %v1536_v39 = vsel %vm1525_vm6, %v2375_v36, 729  ;;  %v1537_v30 = vsel %vm1526_vm7, %v2387_v42, 729  ;;  %v1538_v6 = vsel %vm1527_vm8, %v2390_v43, 729  ;;  %v1539_v27 = vsel %vm1528_vm9, %v2401_v48, 729 }
 0x53a   : >> { %v1540_v31 = vsel %vm1529_vm10, %v2404_v49, 729  ;;  %v1541_v38 = vsel %vm1530_vm11, %v2411_v51, 729  ;;  %v1542_v44 = vsel %vm1531_vm12, %v2414_v52, 729  ;;  %v1543_v14 = vsel %vm1532_vm13, %v2427_v55, 729 }
 0x53b   : >> { %v1544_v11 = vsel %vm1533_vm14, %v2430_v56, 729  ;;  %v1545_v28 = vsel %vm1534_vm15, %v2448_v60, 729  ;;  %v1546_v22 = vsel %vm258_vm0, %v1535_v45, 2147483647  ;;  %v1547_v47 = vsel %vm258_vm0, %v1536_v39, 2147483647 }
 0x53c   : >> { %v1548_v17 = vsel %vm258_vm0, %v1537_v30, 2147483647  ;;  %v1549_v24 = vsel %vm258_vm0, %v1538_v6, 2147483647  ;;  %v1550_v46 = vsel %vm258_vm0, %v1539_v27, 2147483647 }
 0x53d   : >> { %vm1551_vm2 = vcmp.lt.s32.totalorder %v1546_v22, %v1550_v46  ;;  %v1553_v32 = vsel %vm258_vm0, %v1540_v31, 2147483647  ;;  %v1556_v16 = vsel %vm258_vm0, %v1541_v38, 2147483647  ;;  %v1559_v33 = vsel %vm258_vm0, %v1542_v44, 2147483647 }
 0x53e   : >> { %v1552_v1 = vsel %vm1551_vm2, %v1546_v22, %v1550_v46  ;;  %vm1554_vm3 = vcmp.lt.s32.totalorder %v1547_v47, %v1553_v32  ;;  %vm1557_vm4 = vcmp.lt.s32.totalorder %v1548_v17, %v1556_v16  ;;  %vm1560_vm5 = vcmp.lt.s32.totalorder %v1549_v24, %v1559_v33  ;;  %v2200_v46 = vld [vmem:[#allocation2] sm:$0xff] }
 0x53f   : >> { %v1555_v37 = vsel %vm1554_vm3, %v1547_v47, %v1553_v32  ;;  %v1558_v29 = vsel %vm1557_vm4, %v1548_v17, %v1556_v16  ;;  %v1562_v5 = vsel %vm258_vm0, %v1543_v14, 2147483647  ;;  %v1565_v25 = vsel %vm258_vm0, %v1544_v11, 2147483647  ;;  %v2201_v16 = vld [vmem:[#allocation2 + $0x8] sm:$0xff] }
 0x540   : >> { %vm1563_vm6 = vcmp.lt.s32.totalorder %v1552_v1, %v1562_v5  ;;  %v1568_v21 = vsel %vm269_vm1, %v1545_v28, 2147483647  ;;  %vm1566_vm7 = vcmp.lt.s32.totalorder %v1555_v37, %v1565_v25  ;;  %v1561_v26 = vsel %vm1560_vm5, %v1549_v24, %v1559_v33 }
 0x541   : >> { %v1564_v40 = vsel %vm1563_vm6, %v1552_v1, %v1562_v5  ;;  %vm1569_vm8 = vcmp.lt.s32.totalorder %v1558_v29, %v1568_v21  ;;  %v1567_v34 = vsel %vm1566_vm7, %v1555_v37, %v1565_v25  ;;  %v2202_v1 = vld [vmem:[#allocation2 + $0x10] sm:$0xff]  ;;  %v2204_v25 = vld [vmem:[#allocation2 + $0x20] sm:$0xff] }
 0x542   : >> { %v1570_v12 = vsel %vm1569_vm8, %v1558_v29, %v1568_v21  ;;  %vm1571_vm9 = vcmp.lt.s32.totalorder %v1564_v40, %v1567_v34  ;;  %v2203_v29 = vld [vmem:[#allocation2 + $0x18] sm:$0xff] }
 0x543   : >> { %vm1573_vm10 = vcmp.lt.s32.totalorder %v1570_v12, %v1561_v26  ;;  %v1572_v41 = vsel %vm1571_vm9, %v1564_v40, %v1567_v34  ;;  %v2205_v40 = vld [vmem:[#allocation2 + $0x28] sm:$0xff]  ;;  %v2206_v34 = vld [vmem:[#allocation2 + $0x30] sm:$0xff] }
 0x544   : >> { %v1574_v50 = vsel %vm1573_vm10, %v1570_v12, %v1561_v26 }
 0x545   : >> { %vm1575_vm11 = vcmp.lt.s32.totalorder %v1572_v41, %v1574_v50 }
 0x546   : >> { %v1576_v19 = vsel %vm1575_vm11, %v1572_v41, %v1574_v50  ;;  %v2207_v41 = vld [vmem:[#allocation2 + $0x38] sm:$0xff] }
 0x547   : >> { %v1578_v15 = vshra.s32 %v1576_v19, 16  ;;  %v1577_v13 = vand.u32 65535, %v1576_v19  ;;  %v2208_v19 = vld [vmem:[#allocation2 + $0x40] sm:$0xff] }
 0x549   : >> { %v1580_v20 = vcvt.s32.f32 %v1578_v15  ;;  %v1579_v39 = vcvt.s32.f32 %v1577_v13 }
 0x54b   : >> { %1581 = vmin.xlane.f32.xlu0 %v1580_v20 }
 0x5d8   : >> { %v1582_v45 = vpop.xlane.xlu0 %1581 }
 0x5d9   : >> { %vm1583_vm12 = vcmp.eq.f32.partialorder %v1580_v20, %v1582_v45  ;;  %v1588_v6 = vcvt.f32.s32 %v1582_v45  ;;  %v2209_v20 = vld [vmem:[#allocation2 + $0x48] sm:$0xff]  ;;  %v2210_v45 = vld [vmem:[#allocation2 + $0x50] sm:$0x1] }
 0x5da   : >> { %v1584_v30 = vsel %vm1583_vm12, %v1579_v39, inf }
 0x5db   : >> { %1585 = vmin.xlane.f32.xlu1 %v1584_v30  ;;  %v1589_v31 = vshll.u32 %v1588_v6, 16 }
 0x668   : >> { %v1586_v27 = vpop.xlane.xlu1 %1585 }
 0x669   : >> { %v1587_v38 = vcvt.f32.s32 %v1586_v27 }
 0x66b   : >> { %v1590_v44 = vadd.s32 %v1589_v31, %v1587_v38 }
 0x66d   : >> { %v1591_v14 = vrot.slane %v1590_v44, 4 }
 0x66f   : >> { %vm1592_vm13 = vcmp.lt.s32.totalorder %v1590_v44, %v1591_v14 }
 0x670   : >> { %v1593_v11 = vsel %vm1592_vm13, %v1590_v44, %v1591_v14 }
 0x671   : >> { %v1594_v28 = vrot.slane %v1593_v11, 2 }
 0x673   : >> { %vm1595_vm14 = vcmp.lt.s32.totalorder %v1593_v11, %v1594_v28 }
 0x674   : >> { %v1596_v22 = vsel %vm1595_vm14, %v1593_v11, %v1594_v28 }
 0x675   : >> { %v1597_v47 = vrot.slane %v1596_v22, 1 }
 0x677   : >> { %vm1598_vm15 = vcmp.lt.s32.totalorder %v1596_v22, %v1597_v47 }
 0x678   : >> { %v1599_v17 = vsel %vm1598_vm15, %v1596_v22, %v1597_v47 }
 0x679   : >> { %2117 = vpush %v1599_v17 }
 0x6aa   : >> { %s2118_s28 = spop %2117 }
 0x6ab   : >> { %v1601_v24 = vstv %s2118_s28 }
 0x6ac   : >> { %vm1602_vm2 = vcmp.eq.s32.totalorder %v2372_v35, %v1601_v24  ;;  %vm1603_vm3 = vcmp.eq.s32.totalorder %v2375_v36, %v1601_v24  ;;  %vm1604_vm4 = vcmp.eq.s32.totalorder %v2387_v42, %v1601_v24  ;;  %vm1605_vm5 = vcmp.eq.s32.totalorder %v2390_v43, %v1601_v24 }
 0x6ad   : >> { %vm1606_vm6 = vcmp.eq.s32.totalorder %v2401_v48, %v1601_v24  ;;  %vm1607_vm7 = vcmp.eq.s32.totalorder %v2404_v49, %v1601_v24  ;;  %vm1608_vm8 = vcmp.eq.s32.totalorder %v2411_v51, %v1601_v24  ;;  %vm1609_vm9 = vcmp.eq.s32.totalorder %v2414_v52, %v1601_v24 }
 0x6ae   : >> { %vm1610_vm10 = vcmp.eq.s32.totalorder %v2427_v55, %v1601_v24  ;;  %vm1611_vm11 = vcmp.eq.s32.totalorder %v2430_v56, %v1601_v24  ;;  %vm1612_vm12 = vcmp.eq.s32.totalorder %v2448_v60, %v1601_v24  ;;  %v1613_v32 = vsel %vm1602_vm2, 1.0, %v2200_v46 }
 0x6af   : >> { %v1614_v33 = vsel %vm1603_vm3, 1.0, %v2201_v16  ;;  %v1615_v37 = vsel %vm1604_vm4, 1.0, %v2202_v1  ;;  %v1616_v5 = vsel %vm1605_vm5, 1.0, %v2203_v29  ;;  %v1617_v21 = vsel %vm1606_vm6, 1.0, %v2204_v25  ;;  %1624 = vst.msk [vmem:[#allocation2] sm:$0xff] %vm258_vm0, %v1613_v32 }
 0x6b0   : >> { %v1618_v26 = vsel %vm1607_vm7, 1.0, %v2205_v40  ;;  %v1619_v12 = vsel %vm1608_vm8, 1.0, %v2206_v34  ;;  %v1620_v50 = vsel %vm1609_vm9, 1.0, %v2207_v41  ;;  %v1621_v15 = vsel %vm1610_vm10, 1.0, %v2208_v19  ;;  %1625 = vst.msk [vmem:[#allocation2 + $0x8] sm:$0xff] %vm258_vm0, %v1614_v33  ;;  %1626 = vst.msk [vmem:[#allocation2 + $0x10] sm:$0xff] %vm258_vm0, %v1615_v37 }
 0x6b1   : >> { %1627 = vst.msk [vmem:[#allocation2 + $0x18] sm:$0xff] %vm258_vm0, %v1616_v5  ;;  %1628 = vst.msk [vmem:[#allocation2 + $0x20] sm:$0xff] %vm258_vm0, %v1617_v21  ;;  %v1622_v13 = vsel %vm1611_vm11, 1.0, %v2209_v20  ;;  %v1623_v39 = vsel %vm1612_vm12, 1.0, %v2210_v45 }
 0x6b2   : >> { %1629 = vst.msk [vmem:[#allocation2 + $0x28] sm:$0xff] %vm258_vm0, %v1618_v26  ;;  %1630 = vst.msk [vmem:[#allocation2 + $0x30] sm:$0xff] %vm258_vm0, %v1619_v12 }
 0x6b3   : >> { %1631 = vst.msk [vmem:[#allocation2 + $0x38] sm:$0xff] %vm258_vm0, %v1620_v50  ;;  %1632 = vst.msk [vmem:[#allocation2 + $0x40] sm:$0xff] %vm258_vm0, %v1621_v15 }
 0x6b4   : >> { %1633 = vst.msk [vmem:[#allocation2 + $0x48] sm:$0xff] %vm258_vm0, %v1622_v13 }
 0x6b5   : >> { %1634 = vst.msk [vmem:[#allocation2 + $0x50] sm:$0x1] %vm269_vm1, %v1623_v39  ;;  %344 = sbr.rel (!%p341_p10) target bundleno = 51 (0x33), region = 89 }
 0x6bc PF: > { %v1635_v30 = vld [vmem:[#allocation2] sm:$0xff]  ;;  %v1636_v6 = vld [vmem:[#allocation2 + $0x8] sm:$0xff]  ;;  %v1637_v27 = vld [vmem:[#allocation2 + $0x10] sm:$0xff] }
 0x6bd   : > { %1646 = vst.msk [vmem:[%s2347_s29] sm:$0xff] %vm258_vm0, %v1635_v30  ;;  %1647 = vst.msk [vmem:[%s2347_s29 + $0x8] sm:$0xff] %vm258_vm0, %v1636_v6  ;;  %v1638_v2 = vld [vmem:[#allocation2 + $0x18] sm:$0xff]  ;;  %v1639_v3 = vld [vmem:[#allocation2 + $0x20] sm:$0xff] }
 0x6be   : > { %1648 = vst.msk [vmem:[%s2347_s29 + $0x10] sm:$0xff] %vm258_vm0, %v1637_v27  ;;  %v1640_v4 = vld [vmem:[#allocation2 + $0x28] sm:$0xff]  ;;  %1649 = vst.msk [vmem:[%s2347_s29 + $0x18] sm:$0xff] %vm258_vm0, %v1638_v2  ;;  %v1641_v7 = vld [vmem:[#allocation2 + $0x30] sm:$0xff] }
 0x6bf   : > { %1650 = vst.msk [vmem:[%s2347_s29 + $0x20] sm:$0xff] %vm258_vm0, %v1639_v3  ;;  %1651 = vst.msk [vmem:[%s2347_s29 + $0x28] sm:$0xff] %vm258_vm0, %v1640_v4  ;;  %v1642_v8 = vld [vmem:[#allocation2 + $0x38] sm:$0xff]  ;;  %v1643_v9 = vld [vmem:[#allocation2 + $0x40] sm:$0xff] }
 0x6c0   : > { %1652 = vst.msk [vmem:[%s2347_s29 + $0x30] sm:$0xff] %vm258_vm0, %v1641_v7  ;;  %1653 = vst.msk [vmem:[%s2347_s29 + $0x38] sm:$0xff] %vm258_vm0, %v1642_v8  ;;  %v1644_v10 = vld [vmem:[#allocation2 + $0x48] sm:$0xff]  ;;  %v1645_v18 = vld [vmem:[#allocation2 + $0x50] sm:$0x1] }
 0x6c1   : > { %1654 = vst.msk [vmem:[%s2347_s29 + $0x40] sm:$0xff] %vm258_vm0, %v1643_v9  ;;  %v1657_v23 = vld [vmem:[#allocation3] sm:$0xff]  ;;  %1655 = vst.msk [vmem:[%s2347_s29 + $0x48] sm:$0xff] %vm258_vm0, %v1644_v10  ;;  %v1658_v35 = vld [vmem:[#allocation3 + $0x8] sm:$0xff] }
 0x6c2   : > { %1656 = vst.msk [vmem:[%s2347_s29 + $0x50] sm:$0x1] %vm269_vm1, %v1645_v18  ;;  %v1659_v36 = vld [vmem:[#allocation3 + $0x10] sm:$0xff]  ;;  %v1660_v42 = vld [vmem:[#allocation3 + $0x18] sm:$0xff]  ;;  %v1661_v43 = vld [vmem:[#allocation3 + $0x20] sm:$0xff] }
 0x6c3   : > { %1668 = vst.msk [vmem:[%s2357_s10] sm:$0xff] %vm258_vm0, %v1657_v23  ;;  %1669 = vst.msk [vmem:[%s2357_s10 + $0x8] sm:$0xff] %vm258_vm0, %v1658_v35  ;;  %v1662_v48 = vld [vmem:[#allocation3 + $0x28] sm:$0xff]  ;;  %v1663_v49 = vld [vmem:[#allocation3 + $0x30] sm:$0xff] }
 0x6c4   : > { %1670 = vst.msk [vmem:[%s2357_s10 + $0x10] sm:$0xff] %vm258_vm0, %v1659_v36  ;;  %1671 = vst.msk [vmem:[%s2357_s10 + $0x18] sm:$0xff] %vm258_vm0, %v1660_v42  ;;  %v1664_v51 = vld [vmem:[#allocation3 + $0x38] sm:$0xff]  ;;  %v1665_v52 = vld [vmem:[#allocation3 + $0x40] sm:$0xff] }
 0x6c5   : > { %1672 = vst.msk [vmem:[%s2357_s10 + $0x20] sm:$0xff] %vm258_vm0, %v1661_v43  ;;  %1673 = vst.msk [vmem:[%s2357_s10 + $0x28] sm:$0xff] %vm258_vm0, %v1662_v48  ;;  %v1666_v53 = vld [vmem:[#allocation3 + $0x48] sm:$0xff]  ;;  %v1667_v54 = vld [vmem:[#allocation3 + $0x50] sm:$0x1] }
 0x6c6   : > { %1674 = vst.msk [vmem:[%s2357_s10 + $0x30] sm:$0xff] %vm258_vm0, %v1663_v49  ;;  %1675 = vst.msk [vmem:[%s2357_s10 + $0x38] sm:$0xff] %vm258_vm0, %v1664_v51 }
 0x6c7   : > { %1676 = vst.msk [vmem:[%s2357_s10 + $0x40] sm:$0xff] %vm258_vm0, %v1665_v52  ;;  %1677 = vst.msk [vmem:[%s2357_s10 + $0x48] sm:$0xff] %vm258_vm0, %v1666_v53 }
 0x6c8   : > { %1678 = vst.msk [vmem:[%s2357_s10 + $0x50] sm:$0x1] %vm269_vm1, %v1667_v54 }
 0x6c9 PF: > { %s23_s26 = sadd.s32 1, %s2235_s26  }
 0x6ca   : > { %p20_p11 = scmp.ge.s32.totalorder %s23_s26, 4  }
 0x6cc   :  { %22 = sbr.rel (!%p20_p11) target bundleno = 16 (0x10), region = 100 }

</bundles_post_ra>
